<compile_context>
chip_gen: v7x
topology: tpu7x:2x2x1
jax: 0.10.0
libtpu: 0.0.40
codegen_flags: <defaults>
</compile_context>

<pallas_src>
import math

import jax
import jax.numpy as jnp
from jax.experimental import pallas as pl
from jax.experimental.pallas import tpu as pltpu

_LANE = 128
_PACKED_SUBLANE = 16                      # bf16 M-axis granularity (2 rows / sublane)
_VMEM_BUDGET = 56 * 1024 * 1024           # keep headroom under v7x's 64 MiB / TC


def _round_up(x, m):
    return (x + m - 1) // m * m


def _pad_to(a, shape):
    return jnp.pad(a, [(0, t - s) for s, t in zip(a.shape, shape)])


# ---------------------------------------------------------------------------
# Kernel body: one batch tile per grid step, weights resident in VMEM.
# ---------------------------------------------------------------------------
def _time_embedding_kernel(x_ref, freq_ref, w1s_ref, w1c_ref, b1_ref,
                           w2_ref, b2_ref, o_ref):
    mm_dtype = w1s_ref.dtype

    # Positional embedding: outer(x * scale, freqs) -> sin / cos (f32 VPU/EUP math).
    ang = x_ref[...] * freq_ref[...]                      # (tb, Hp)
    s = jnp.sin(ang).astype(mm_dtype)
    c = jnp.cos(ang).astype(mm_dtype)

    # Linear(dim -> 2*dim) without a lane-axis concat: two split-weight MXU dots.
    h = jnp.dot(s, w1s_ref[...], preferred_element_type=jnp.float32)
    h = h + jnp.dot(c, w1c_ref[...], preferred_element_type=jnp.float32)
    h = jnp.maximum(h + b1_ref[...], 0.0)                 # bias + ReLU in f32

    # Linear(2*dim -> dim).
    out = jnp.dot(h.astype(mm_dtype), w2_ref[...], preferred_element_type=jnp.float32)
    o_ref[...] = (out + b2_ref[...]).astype(o_ref.dtype)


def _choose_tile(batch, tile_b):
    """Batch tile: multiple of 16 (bf16 packing) / 128 (MXU M); >=2 grid steps."""
    b_ceil = _round_up(batch, _PACKED_SUBLANE)
    # >=2 grid steps whenever the batch allows it, so v7x's two TensorCores both
    # get work under dimension_semantics=("parallel",).
    min_steps = 2 if b_ceil >= 2 * _PACKED_SUBLANE else 1
    steps = max(min_steps, pl.cdiv(b_ceil, tile_b))
    tb = _round_up(pl.cdiv(b_ceil, steps), _PACKED_SUBLANE)
    if tb >= _LANE:                                       # MXU M granularity (v5e: 128)
        tb = _round_up(tb, _LANE)
    return tb, _round_up(b_ceil, tb)


def _vmem_bytes(tb, half_pad, hid_pad, dim_pad, mm_bytes, out_bytes, const_bufs):
    weights = (2 * half_pad * hid_pad + hid_pad * dim_pad) * mm_bytes
    consts = (half_pad + hid_pad + dim_pad) * 4
    resident = const_bufs * (weights + consts)            # 1x if Buffered(1), else 2x
    x_tiles = 2 * tb * 1 * 4                              # double-buffered input tile
    out_tiles = 2 * tb * dim_pad * out_bytes              # double-buffered output tile
    inter = tb * (3 * half_pad + hid_pad + dim_pad) * 4   # ang/s/c/h/out scratch (f32)
    return resident + x_tiles + out_tiles + inter


def time_embedding(x, params, *, dim, scale=1.0, tile_b=1024,
                   matmul_dtype=jnp.bfloat16, out_dtype=jnp.float32):
    """x: (B,) float timesteps -> (B, dim) time embeddings in `out_dtype`."""
    assert dim % 2 == 0
    half_dim = dim // 2
    hid = 2 * dim
    B = x.shape[0]

    half_pad = _round_up(half_dim, _LANE)
    hid_pad = _round_up(hid, _LANE)
    dim_pad = _round_up(dim, _LANE)

    mm_bytes = jnp.dtype(matmul_dtype).itemsize
    out_bytes = jnp.dtype(out_dtype).itemsize

    tb, b_pad = _choose_tile(B, tile_b)
    # Shrink the batch tile if the per-step VMEM footprint (single-buffered
    # weights assumed) would blow the budget; weights must fit regardless.
    while (tb > _PACKED_SUBLANE
           and _vmem_bytes(tb, half_pad, hid_pad, dim_pad, mm_bytes, out_bytes, 1)
           > _VMEM_BUDGET):
        tb = max(_PACKED_SUBLANE, _round_up(tb // 2, _PACKED_SUBLANE))
        b_pad = _round_up(_round_up(B, _PACKED_SUBLANE), tb)
    grid = (b_pad // tb,)

    # Frequencies with scale folded in; zero-padded lanes give cos(0)=1 and are
    # cancelled by the zero-padded rows of w1c below (weight padding MUST be 0).
    freqs = scale * jnp.exp(
        jnp.arange(half_dim, dtype=jnp.float32) * (-math.log(10000.0) / half_dim))
    freqs = _pad_to(freqs.reshape(1, half_dim), (1, half_pad))

    w1, b1, w2, b2 = params   # (dim,2dim) (1,2dim) (2dim,dim) (1,dim), in/out layout

    # Split w1 into sin/cos halves (kills the concat), zero-pad, store bf16.
    w1s = _pad_to(w1[:half_dim, :], (half_pad, hid_pad)).astype(matmul_dtype)
    w1c = _pad_to(w1[half_dim:, :], (half_pad, hid_pad)).astype(matmul_dtype)
    w2p = _pad_to(w2, (hid_pad, dim_pad)).astype(matmul_dtype)
    b1p = _pad_to(b1, (1, hid_pad)).astype(jnp.float32)
    b2p = _pad_to(b2, (1, dim_pad)).astype(jnp.float32)

    x2d = jnp.pad(x.astype(jnp.float32), (0, b_pad - B)).reshape(b_pad, 1)

    cost = pl.CostEstimate(
        flops=2 * b_pad * (2 * half_pad * hid_pad + hid_pad * dim_pad),
        transcendentals=2 * b_pad * half_pad,
        bytes_accessed=int(
            b_pad * 4
            + (2 * half_pad * hid_pad + hid_pad * dim_pad) * mm_bytes
            + (half_pad + hid_pad + dim_pad) * 4
            + b_pad * dim_pad * out_bytes),
    )

    def build(single_buffer_consts):
        const_bufs = 1 if single_buffer_consts else 2
        need = _vmem_bytes(tb, half_pad, hid_pad, dim_pad, mm_bytes, out_bytes,
                           const_bufs)
        vmem_limit = int(max(32 * 1024 * 1024, min(_VMEM_BUDGET, 2 * need)))
        vmem_limit = int(max(vmem_limit, need + (2 << 20)))  # never below actual need

        const_kwargs = (dict(pipeline_mode=pl.Buffered(1))
                        if single_buffer_consts else {})

        def const_spec(shape):
            return pl.BlockSpec(shape, lambda i: (0, 0), **const_kwargs)

        return pl.pallas_call(
            _time_embedding_kernel,
            out_shape=jax.ShapeDtypeStruct((b_pad, dim_pad), out_dtype),
            grid=grid,
            in_specs=[
                pl.BlockSpec((tb, 1), lambda i: (i, 0)),      # x tile (pipelined)
                const_spec((1, half_pad)),                    # freqs   (resident)
                const_spec((half_pad, hid_pad)),              # w1_sin  (resident)
                const_spec((half_pad, hid_pad)),              # w1_cos  (resident)
                const_spec((1, hid_pad)),                     # b1      (resident)
                const_spec((hid_pad, dim_pad)),               # w2      (resident)
                const_spec((1, dim_pad)),                     # b2      (resident)
            ],
            out_specs=pl.BlockSpec((tb, dim_pad), lambda i: (i, 0)),
            compiler_params=pltpu.CompilerParams(
                dimension_semantics=("parallel",),
                vmem_limit_bytes=vmem_limit,
            ),
            cost_estimate=cost,
        )

    args = (x2d, freqs, w1s, w1c, b1p, w2p, b2p)
    try:
        out_full = build(single_buffer_consts=True)(*args)
        out_full = jax.block_until_ready(out_full)  # surface any lowering/runtime issue
    except Exception:
        # pipeline_mode=pl.Buffered(1) not accepted by this JAX build: fall back to
        # default (double-buffered) pipelining for the constant operands.
        out_full = build(single_buffer_consts=False)(*args)

    # Slice only the axes that were actually padded (avoid an extra full HBM copy).
    if b_pad == B and dim_pad == dim:
        return out_full
    out = out_full
    if dim_pad != dim:
        out = out[:, :dim]
    if b_pad != B:
        out = out[:B]
    return out


def init_params(key, dim):
    """Synthetic params matching nn.Linear(dim, 2*dim) / nn.Linear(2*dim, dim).

    PyTorch stores Linear weight as (out, in); we keep the transposed (in, out)
    layout so the kernel does plain row-major matmuls.
    """
    k1, k2, k3, k4 = jax.random.split(key, 4)
    bound1 = 1.0 / math.sqrt(dim)
    bound2 = 1.0 / math.sqrt(2 * dim)
    w1 = jax.random.uniform(k1, (dim, 2 * dim), jnp.float32, -bound1, bound1)
    b1 = jax.random.uniform(k2, (1, 2 * dim), jnp.float32, -bound1, bound1)
    w2 = jax.random.uniform(k3, (2 * dim, dim), jnp.float32, -bound2, bound2)
    b2 = jax.random.uniform(k4, (1, dim), jnp.float32, -bound2, bound2)
    return w1, b1, w2, b2


def reference_forward(x, params, *, dim, scale=1.0):
    """Pure-JAX f32 reference mirroring the PyTorch forward."""
    half_dim = dim // 2
    freqs = jnp.exp(jnp.arange(half_dim, dtype=jnp.float32)
                    * (-math.log(10000.0) / half_dim))
    ang = (x * scale)[:, None] * freqs[None, :]
    emb = jnp.concatenate([jnp.sin(ang), jnp.cos(ang)], axis=-1)
    w1, b1, w2, b2 = params
    h = jnp.maximum(emb @ w1 + b1, 0.0)
    return h @ w2 + b2


if __name__ == "__main__":
    DIM = 32
    SCALE = 1.0
    BATCH = 8

    key = jax.random.PRNGKey(0)
    kp, kx = jax.random.split(key)
    params = init_params(kp, DIM)

    # Timesteps (like diffusion timesteps), small positive floats.
    x = jax.random.uniform(kx, (BATCH,), jnp.float32, 0.0, 100.0)

    out = time_embedding(x, params, dim=DIM, scale=SCALE)
    out = jax.block_until_ready(out)

    ref = reference_forward(x, params, dim=DIM, scale=SCALE)
    assert out.shape == (BATCH, DIM)
    # bf16 matmul operands (f32 accumulation) -> looser tolerance than pure f32.
    assert jnp.allclose(out, ref, atol=5e-2, rtol=5e-2), "mismatch vs reference"

    print("KERNEL_OK")
</pallas_src>

<mosaic_0001>
module attributes {stable_mosaic.version = 11 : i64} {
  func.func @_time_embedding_kernel(%arg0: i32, %arg1: memref<16x1xf32, #tpu.memory_space<vmem>>, %arg2: memref<1x128xf32, #tpu.memory_space<vmem>>, %arg3: memref<128x128xbf16, #tpu.memory_space<vmem>>, %arg4: memref<128x128xbf16, #tpu.memory_space<vmem>>, %arg5: memref<1x128xf32, #tpu.memory_space<vmem>>, %arg6: memref<128x128xbf16, #tpu.memory_space<vmem>>, %arg7: memref<1x128xf32, #tpu.memory_space<vmem>>, %arg8: memref<16x128xf32, #tpu.memory_space<vmem>>) attributes {dimension_semantics = [#tpu.dimension_semantics<parallel>], iteration_bounds = array<i64: 1>, scalar_prefetch = 0 : i64, scratch_operands = 0 : i64, tpu.core_type = #tpu.core_type<tc>, window_params = [{transform_indices = @transform_0, window_bounds = array<i64: 16, 1>}, {pipeline_mode = #tpu.pipeline_mode<synchronous>, transform_indices = @transform_1, window_bounds = array<i64: 1, 128>}, {pipeline_mode = #tpu.pipeline_mode<synchronous>, transform_indices = @transform_2, window_bounds = array<i64: 128, 128>}, {pipeline_mode = #tpu.pipeline_mode<synchronous>, transform_indices = @transform_3, window_bounds = array<i64: 128, 128>}, {pipeline_mode = #tpu.pipeline_mode<synchronous>, transform_indices = @transform_4, window_bounds = array<i64: 1, 128>}, {pipeline_mode = #tpu.pipeline_mode<synchronous>, transform_indices = @transform_5, window_bounds = array<i64: 128, 128>}, {pipeline_mode = #tpu.pipeline_mode<synchronous>, transform_indices = @transform_6, window_bounds = array<i64: 1, 128>}, {transform_indices = @transform_7, window_bounds = array<i64: 16, 128>}]} {
    %c0 = arith.constant 0 : index
    %c0_0 = arith.constant 0 : index
    %0 = vector.load %arg1[%c0, %c0_0] : memref<16x1xf32, #tpu.memory_space<vmem>>, vector<16x1xf32>
    %c0_1 = arith.constant 0 : index
    %c0_2 = arith.constant 0 : index
    %1 = vector.load %arg2[%c0_1, %c0_2] : memref<1x128xf32, #tpu.memory_space<vmem>>, vector<1x128xf32>
    %2 = vector.broadcast %0 : vector<16x1xf32> to vector<16x128xf32>
    %3 = vector.broadcast %1 : vector<1x128xf32> to vector<16x128xf32>
    %4 = arith.mulf %2, %3 : vector<16x128xf32>
    %5 = math.sin %4 : vector<16x128xf32>
    %6 = arith.truncf %5 : vector<16x128xf32> to vector<16x128xbf16>
    %7 = math.cos %4 : vector<16x128xf32>
    %8 = arith.truncf %7 : vector<16x128xf32> to vector<16x128xbf16>
    %c0_3 = arith.constant 0 : index
    %c0_4 = arith.constant 0 : index
    %9 = vector.load %arg3[%c0_3, %c0_4] : memref<128x128xbf16, #tpu.memory_space<vmem>>, vector<128x128xbf16>
    %cst = arith.constant dense<0.000000e+00> : vector<16x128xf32>
    %10 = tpu.matmul %6, %9, %cst {dimension_numbers = #tpu.dot_dimension_numbers<[1], [0], [0], [1], [0, 0, 1, 1], [], []>} : vector<16x128xbf16>, vector<128x128xbf16>, vector<16x128xf32> -> vector<16x128xf32>
    %c0_5 = arith.constant 0 : index
    %c0_6 = arith.constant 0 : index
    %11 = vector.load %arg4[%c0_5, %c0_6] : memref<128x128xbf16, #tpu.memory_space<vmem>>, vector<128x128xbf16>
    %cst_7 = arith.constant dense<0.000000e+00> : vector<16x128xf32>
    %12 = tpu.matmul %8, %11, %cst_7 {dimension_numbers = #tpu.dot_dimension_numbers<[1], [0], [0], [1], [0, 0, 1, 1], [], []>} : vector<16x128xbf16>, vector<128x128xbf16>, vector<16x128xf32> -> vector<16x128xf32>
    %13 = arith.addf %10, %12 : vector<16x128xf32>
    %c0_8 = arith.constant 0 : index
    %c0_9 = arith.constant 0 : index
    %14 = vector.load %arg5[%c0_8, %c0_9] : memref<1x128xf32, #tpu.memory_space<vmem>>, vector<1x128xf32>
    %15 = vector.broadcast %14 : vector<1x128xf32> to vector<16x128xf32>
    %16 = arith.addf %13, %15 : vector<16x128xf32>
    %cst_10 = arith.constant 0.000000e+00 : f32
    %17 = vector.broadcast %cst_10 : f32 to vector<16x128xf32>
    %18 = arith.maximumf %16, %17 : vector<16x128xf32>
    %19 = arith.truncf %18 : vector<16x128xf32> to vector<16x128xbf16>
    %c0_11 = arith.constant 0 : index
    %c0_12 = arith.constant 0 : index
    %20 = vector.load %arg6[%c0_11, %c0_12] : memref<128x128xbf16, #tpu.memory_space<vmem>>, vector<128x128xbf16>
    %cst_13 = arith.constant dense<0.000000e+00> : vector<16x128xf32>
    %21 = tpu.matmul %19, %20, %cst_13 {dimension_numbers = #tpu.dot_dimension_numbers<[1], [0], [0], [1], [0, 0, 1, 1], [], []>} : vector<16x128xbf16>, vector<128x128xbf16>, vector<16x128xf32> -> vector<16x128xf32>
    %c0_14 = arith.constant 0 : index
    %c0_15 = arith.constant 0 : index
    %22 = vector.load %arg7[%c0_14, %c0_15] : memref<1x128xf32, #tpu.memory_space<vmem>>, vector<1x128xf32>
    %23 = vector.broadcast %22 : vector<1x128xf32> to vector<16x128xf32>
    %24 = arith.addf %21, %23 : vector<16x128xf32>
    %c0_16 = arith.constant 0 : index
    %c0_17 = arith.constant 0 : index
    %25 = vector.load %arg8[%c0_16, %c0_17] : memref<16x128xf32, #tpu.memory_space<vmem>>, vector<16x128xf32>
    tpu.vector_store %arg8[%c0_16, %c0_17], %24 {strides = array<i32>} : memref<16x128xf32, #tpu.memory_space<vmem>>, vector<16x128xf32>,
    return
  }
  func.func @transform_0(%arg0: i32) -> (i32, i32) {
    %c0_i32 = arith.constant 0 : i32
    %c0_i32_0 = arith.constant 0 : i32
    return %arg0, %c0_i32 : i32, i32
  }
  func.func @transform_1(%arg0: i32) -> (i32, i32) {
    %c0_i32 = arith.constant 0 : i32
    %c0_i32_0 = arith.constant 0 : i32
    %c0_i32_1 = arith.constant 0 : i32
    return %c0_i32, %c0_i32_0 : i32, i32
  }
  func.func @transform_2(%arg0: i32) -> (i32, i32) {
    %c0_i32 = arith.constant 0 : i32
    %c0_i32_0 = arith.constant 0 : i32
    %c0_i32_1 = arith.constant 0 : i32
    return %c0_i32, %c0_i32_0 : i32, i32
  }
  func.func @transform_3(%arg0: i32) -> (i32, i32) {
    %c0_i32 = arith.constant 0 : i32
    %c0_i32_0 = arith.constant 0 : i32
    %c0_i32_1 = arith.constant 0 : i32
    return %c0_i32, %c0_i32_0 : i32, i32
  }
  func.func @transform_4(%arg0: i32) -> (i32, i32) {
    %c0_i32 = arith.constant 0 : i32
    %c0_i32_0 = arith.constant 0 : i32
    %c0_i32_1 = arith.constant 0 : i32
    return %c0_i32, %c0_i32_0 : i32, i32
  }
  func.func @transform_5(%arg0: i32) -> (i32, i32) {
    %c0_i32 = arith.constant 0 : i32
    %c0_i32_0 = arith.constant 0 : i32
    %c0_i32_1 = arith.constant 0 : i32
    return %c0_i32, %c0_i32_0 : i32, i32
  }
  func.func @transform_6(%arg0: i32) -> (i32, i32) {
    %c0_i32 = arith.constant 0 : i32
    %c0_i32_0 = arith.constant 0 : i32
    %c0_i32_1 = arith.constant 0 : i32
    return %c0_i32, %c0_i32_0 : i32, i32
  }
  func.func @transform_7(%arg0: i32) -> (i32, i32) {
    %c0_i32 = arith.constant 0 : i32
    %c0_i32_0 = arith.constant 0 : i32
    return %arg0, %c0_i32 : i32, i32
  }
}

module attributes {stable_mosaic.version = 11 : i64} {
  func.func @_time_embedding_kernel(%arg0: i32, %arg1: memref<16x1xf32, #tpu.memory_space<vmem>>, %arg2: memref<1x128xf32, #tpu.memory_space<vmem>>, %arg3: memref<128x128xbf16, #tpu.memory_space<vmem>>, %arg4: memref<128x128xbf16, #tpu.memory_space<vmem>>, %arg5: memref<1x128xf32, #tpu.memory_space<vmem>>, %arg6: memref<128x128xbf16, #tpu.memory_space<vmem>>, %arg7: memref<1x128xf32, #tpu.memory_space<vmem>>, %arg8: memref<16x128xf32, #tpu.memory_space<vmem>>) attributes {dimension_semantics = [#tpu.dimension_semantics<parallel>], iteration_bounds = array<i64: 1>, scalar_prefetch = 0 : i64, scratch_operands = 0 : i64, tpu.core_type = #tpu.core_type<tc>, window_params = [{transform_indices = @transform_0, window_bounds = array<i64: 16, 1>}, {pipeline_mode = #tpu.pipeline_mode<synchronous>, transform_indices = @transform_1, window_bounds = array<i64: 1, 128>}, {pipeline_mode = #tpu.pipeline_mode<synchronous>, transform_indices = @transform_2, window_bounds = array<i64: 128, 128>}, {pipeline_mode = #tpu.pipeline_mode<synchronous>, transform_indices = @transform_3, window_bounds = array<i64: 128, 128>}, {pipeline_mode = #tpu.pipeline_mode<synchronous>, transform_indices = @transform_4, window_bounds = array<i64: 1, 128>}, {pipeline_mode = #tpu.pipeline_mode<synchronous>, transform_indices = @transform_5, window_bounds = array<i64: 128, 128>}, {pipeline_mode = #tpu.pipeline_mode<synchronous>, transform_indices = @transform_6, window_bounds = array<i64: 1, 128>}, {transform_indices = @transform_7, window_bounds = array<i64: 16, 128>}]} {
    %c0 = arith.constant 0 : index
    %c0_0 = arith.constant 0 : index
    %0 = vector.load %arg1[%c0, %c0_0] : memref<16x1xf32, #tpu.memory_space<vmem>>, vector<16x1xf32>
    %c0_1 = arith.constant 0 : index
    %c0_2 = arith.constant 0 : index
    %1 = vector.load %arg2[%c0_1, %c0_2] : memref<1x128xf32, #tpu.memory_space<vmem>>, vector<1x128xf32>
    %2 = vector.broadcast %0 : vector<16x1xf32> to vector<16x128xf32>
    %3 = vector.broadcast %1 : vector<1x128xf32> to vector<16x128xf32>
    %4 = arith.mulf %2, %3 : vector<16x128xf32>
    %5 = math.sin %4 : vector<16x128xf32>
    %6 = arith.truncf %5 : vector<16x128xf32> to vector<16x128xbf16>
    %7 = math.cos %4 : vector<16x128xf32>
    %8 = arith.truncf %7 : vector<16x128xf32> to vector<16x128xbf16>
    %c0_3 = arith.constant 0 : index
    %c0_4 = arith.constant 0 : index
    %9 = vector.load %arg3[%c0_3, %c0_4] : memref<128x128xbf16, #tpu.memory_space<vmem>>, vector<128x128xbf16>
    %cst = arith.constant dense<0.000000e+00> : vector<16x128xf32>
    %10 = tpu.matmul %6, %9, %cst {dimension_numbers = #tpu.dot_dimension_numbers<[1], [0], [0], [1], [0, 0, 1, 1], [], []>} : vector<16x128xbf16>, vector<128x128xbf16>, vector<16x128xf32> -> vector<16x128xf32>
    %c0_5 = arith.constant 0 : index
    %c0_6 = arith.constant 0 : index
    %11 = vector.load %arg4[%c0_5, %c0_6] : memref<128x128xbf16, #tpu.memory_space<vmem>>, vector<128x128xbf16>
    %cst_7 = arith.constant dense<0.000000e+00> : vector<16x128xf32>
    %12 = tpu.matmul %8, %11, %cst_7 {dimension_numbers = #tpu.dot_dimension_numbers<[1], [0], [0], [1], [0, 0, 1, 1], [], []>} : vector<16x128xbf16>, vector<128x128xbf16>, vector<16x128xf32> -> vector<16x128xf32>
    %13 = arith.addf %10, %12 : vector<16x128xf32>
    %c0_8 = arith.constant 0 : index
    %c0_9 = arith.constant 0 : index
    %14 = vector.load %arg5[%c0_8, %c0_9] : memref<1x128xf32, #tpu.memory_space<vmem>>, vector<1x128xf32>
    %15 = vector.broadcast %14 : vector<1x128xf32> to vector<16x128xf32>
    %16 = arith.addf %13, %15 : vector<16x128xf32>
    %cst_10 = arith.constant 0.000000e+00 : f32
    %17 = vector.broadcast %cst_10 : f32 to vector<16x128xf32>
    %18 = arith.maximumf %16, %17 : vector<16x128xf32>
    %19 = arith.truncf %18 : vector<16x128xf32> to vector<16x128xbf16>
    %c0_11 = arith.constant 0 : index
    %c0_12 = arith.constant 0 : index
    %20 = vector.load %arg6[%c0_11, %c0_12] : memref<128x128xbf16, #tpu.memory_space<vmem>>, vector<128x128xbf16>
    %cst_13 = arith.constant dense<0.000000e+00> : vector<16x128xf32>
    %21 = tpu.matmul %19, %20, %cst_13 {dimension_numbers = #tpu.dot_dimension_numbers<[1], [0], [0], [1], [0, 0, 1, 1], [], []>} : vector<16x128xbf16>, vector<128x128xbf16>, vector<16x128xf32> -> vector<16x128xf32>
    %c0_14 = arith.constant 0 : index
    %c0_15 = arith.constant 0 : index
    %22 = vector.load %arg7[%c0_14, %c0_15] : memref<1x128xf32, #tpu.memory_space<vmem>>, vector<1x128xf32>
    %23 = vector.broadcast %22 : vector<1x128xf32> to vector<16x128xf32>
    %24 = arith.addf %21, %23 : vector<16x128xf32>
    %c0_16 = arith.constant 0 : index
    %c0_17 = arith.constant 0 : index
    %25 = vector.load %arg8[%c0_16, %c0_17] : memref<16x128xf32, #tpu.memory_space<vmem>>, vector<16x128xf32>
    tpu.vector_store %arg8[%c0_16, %c0_17], %24 {strides = array<i32>} : memref<16x128xf32, #tpu.memory_space<vmem>>, vector<16x128xf32>,
    return
  }
  func.func @transform_0(%arg0: i32) -> (i32, i32) {
    %c0_i32 = arith.constant 0 : i32
    %c0_i32_0 = arith.constant 0 : i32
    return %arg0, %c0_i32 : i32, i32
  }
  func.func @transform_1(%arg0: i32) -> (i32, i32) {
    %c0_i32 = arith.constant 0 : i32
    %c0_i32_0 = arith.constant 0 : i32
    %c0_i32_1 = arith.constant 0 : i32
    return %c0_i32, %c0_i32_0 : i32, i32
  }
  func.func @transform_2(%arg0: i32) -> (i32, i32) {
    %c0_i32 = arith.constant 0 : i32
    %c0_i32_0 = arith.constant 0 : i32
    %c0_i32_1 = arith.constant 0 : i32
    return %c0_i32, %c0_i32_0 : i32, i32
  }
  func.func @transform_3(%arg0: i32) -> (i32, i32) {
    %c0_i32 = arith.constant 0 : i32
    %c0_i32_0 = arith.constant 0 : i32
    %c0_i32_1 = arith.constant 0 : i32
    return %c0_i32, %c0_i32_0 : i32, i32
  }
  func.func @transform_4(%arg0: i32) -> (i32, i32) {
    %c0_i32 = arith.constant 0 : i32
    %c0_i32_0 = arith.constant 0 : i32
    %c0_i32_1 = arith.constant 0 : i32
    return %c0_i32, %c0_i32_0 : i32, i32
  }
  func.func @transform_5(%arg0: i32) -> (i32, i32) {
    %c0_i32 = arith.constant 0 : i32
    %c0_i32_0 = arith.constant 0 : i32
    %c0_i32_1 = arith.constant 0 : i32
    return %c0_i32, %c0_i32_0 : i32, i32
  }
  func.func @transform_6(%arg0: i32) -> (i32, i32) {
    %c0_i32 = arith.constant 0 : i32
    %c0_i32_0 = arith.constant 0 : i32
    %c0_i32_1 = arith.constant 0 : i32
    return %c0_i32, %c0_i32_0 : i32, i32
  }
  func.func @transform_7(%arg0: i32) -> (i32, i32) {
    %c0_i32 = arith.constant 0 : i32
    %c0_i32_0 = arith.constant 0 : i32
    return %arg0, %c0_i32 : i32, i32
  }
}

</mosaic_0001>

<bundles_post_ra>
// kernel: tpu_custom_call.1
= control target key start
LH: loop header
LB: loop body
LE: loop exit
PB: predicated region body
PF: predicated region fallthrough
CT: control target
= control target key end

     0   :  { %12 = vsyncpa [#allocation3], 0  ;;  %s1385_s0 = inlined_call_operand.vmem [shape: f32[16,1], index: 0, kind: input, shape index: {}]   ;;  %s1386_s1 = inlined_call_operand.vmem [shape: f32[1,128], index: 1, kind: input, shape index: {}]   ;;  %s1387_s2 = inlined_call_operand.hbm [shape: bf16[128,128], index: 2, kind: input, shape index: {}]   ;;  %s1388_s3 = inlined_call_operand.hbm [shape: bf16[128,128], index: 3, kind: input, shape index: {}]   ;;  %s1389_s4 = inlined_call_operand.vmem [shape: f32[1,128], index: 4, kind: input, shape index: {}]   ;;  %s1390_s5 = inlined_call_operand.hbm [shape: bf16[128,128], index: 5, kind: input, shape index: {}]   ;;  %s1391_s6 = inlined_call_operand.vmem [shape: f32[1,128], index: 6, kind: input, shape index: {}]   ;;  %s1392_s7 = inlined_call_operand.hbm [shape: f32[16,128], index: 7, kind: output, shape index: {}]  }
   0x1   :  { %13 = vsyncpa [#allocation6], 0 }
   0x2   :  { %14 = vsyncpa [#allocation4], 0  ;;  %s1142_s24 = smov [#allocation5]   ;;  %s1143_s26 = smov [#allocation2]  }
   0x3   :  { %s36_s25 = sshll.u32 %s1142_s24, 4  ;;  %s24_s27 = sshll.u32 %s1143_s26, 4  ;;  %s37_s25 = int_to_ptr.vmem [resolvable:$true] %s36_s25  ;;  %s1199_s27 = int_to_ptr.vmem [resolvable:$true] %s24_s27 }
   0x4   :  { %s1048_s30 = scalar_lea.hbm %s1388_s3, 1024 }
   0x5   :  { %p1049_p0 = scmp.ne.s32.totalorder %s1388_s3, %s1048_s30  ;;  %p1052_p1 = scmp.lt.u32.totalorder %s1048_s30, %s1388_s3 }
   0x7   :  { %p1054_p2 = pnand %p1052_p1, %p1049_p0 }
   0x9   :  { %1057 = shalt.err (!%p1054_p2)
}
   0xa   :  { %s1058_s12 = scalar_lea.vmem %s37_s25, 1024  ;;  %p1063_p4 = scmp.lt.s32.totalorder %s37_s25, %s37_s25 }
   0xb   :  { %p1059_p3 = scmp.ne.s32.totalorder %s37_s25, %s1058_s12  ;;  %p1064_p5 = scmp.lt.s32.totalorder %s1058_s12, %s1058_s12 }
   0xd   :  { %p1065_p6 = por %p1064_p5, %p1063_p4 }
   0xf   :  { %p1066_p7 = pnand %p1065_p6, %p1059_p3 }
  0x11   :  { %1069 = shalt.err (!%p1066_p7)
}
  0x12   :  { %s1144_s13 = smov 64   ;;  %s1145_s14 = smov 4  }
  0x13   :  { %42 = dma.hbm_to_vmem [thread:$0]  %s1388_s3, 1024, %s37_s25, [#allocation6], %s1144_s13, %s1144_s13, %s1145_s14  }
  0x14   :  { %s1070_s19 = scalar_lea.hbm %s1387_s2, 1024 }
  0x15   :  { %p1071_p8 = scmp.ne.s32.totalorder %s1387_s2, %s1070_s19  ;;  %p1074_p9 = scmp.lt.u32.totalorder %s1070_s19, %s1387_s2 }
  0x17   :  { %p1076_p10 = pnand %p1074_p9, %p1071_p8 }
  0x19   :  { %1079 = shalt.err (!%p1076_p10)
}
  0x1a   :  { %s1080_s24 = scalar_lea.vmem %s1199_s27, 1024  ;;  %p1085_p12 = scmp.lt.s32.totalorder %s1199_s27, %s1199_s27 }
  0x1b   :  { %p1081_p11 = scmp.ne.s32.totalorder %s1199_s27, %s1080_s24  ;;  %p1086_p13 = scmp.lt.s32.totalorder %s1080_s24, %s1080_s24 }
  0x1d   :  { %p1087_p0 = por %p1086_p13, %p1085_p12 }
  0x1f   :  { %p1088_p1 = pnand %p1087_p0, %p1081_p11 }
  0x21   :  { %1091 = shalt.err (!%p1088_p1)
}
  0x22   :  { %30 = dma.hbm_to_vmem [thread:$0]  %s1387_s2, 1024, %s1199_s27, [#allocation3], %s1144_s13, %s1144_s13, %s1145_s14  }
  0x23   :  { %s1146_s26 = smov [#allocation7]   ;;  %s1092_s8 = scalar_lea.hbm %s1390_s5, 1024 }
  0x24   :  { %s50_s28 = sshll.u32 %s1146_s26, 4  ;;  %p1093_p2 = scmp.ne.s32.totalorder %s1390_s5, %s1092_s8  ;;  %s51_s28 = int_to_ptr.vmem [resolvable:$true] %s50_s28 }
  0x25   :  { %p1096_p3 = scmp.lt.u32.totalorder %s1092_s8, %s1390_s5 }
  0x27   :  { %p1098_p4 = pnand %p1096_p3, %p1093_p2 }
  0x29   :  { %1101 = shalt.err (!%p1098_p4)
}
  0x2a   :  { %s1102_s15 = scalar_lea.vmem %s51_s28, 1024  ;;  %p1107_p6 = scmp.lt.s32.totalorder %s51_s28, %s51_s28 }
  0x2b   :  { %p1103_p5 = scmp.ne.s32.totalorder %s51_s28, %s1102_s15  ;;  %p1108_p7 = scmp.lt.s32.totalorder %s1102_s15, %s1102_s15 }
  0x2d   :  { %p1109_p8 = por %p1108_p7, %p1107_p6 }
  0x2f   :  { %p1110_p9 = pnand %p1109_p8, %p1103_p5 }
  0x31   :  { %1113 = shalt.err (!%p1110_p9)
}
  0x32   :  { %56 = dma.hbm_to_vmem [thread:$0]  %s1390_s5, 1024, %s51_s28, [#allocation6], %s1144_s13, %s1144_s13, %s1145_s14  }
  0x33   :  { %1136 = dma.done.wait [#allocation3], 1024  }
  0x34   :  { %1137 = vsyncadd [#allocation3], 4294966272 }
  0x35   :  { %1138 = dma.done.wait [#allocation6], 2048  }
  0x36   :  { %1139 = vsyncadd [#allocation6], 4294965248  ;;  %v1147_v0 = vmov 0   ;;  %v69_v1 = vld [vmem:[%s1385_s0] sm:$0xff]  ;;  %v70_v2 = vld [vmem:[%s1385_s0 + $0x8] sm:$0xff]  ;;  %v1148_v5 = vmov 0.0  }
  0x37   :  { %1015 = vset.pattern.permute.xlu0 %v1147_v0  ;;  %v1016_v3 = vld [vmem:[#allocation5] sm:$0xff]   ;;  %930 = vmatprep.subr.bf16.mxu0 %v1148_v5  ;;  %v1018_v6 = vld [vmem:[#allocation5 + $0x8] sm:$0xff]   ;;  %v1020_v8 = vld [vmem:[#allocation5 + $0x10] sm:$0xff]   ;;  %vm1149_vm0 = vmmov 0   ;;  %v1150_v41 = vmov 683565275  }
  0x38   :  { %74 = vperm.xlu0 %1015, %v69_v1   ;;  %v1017_v4 = vld [vmem:[#allocation2] sm:$0xff]   ;;  %950 = vmatprep.subr.bf16.mxu1 %v1148_v5  ;;  %v1019_v7 = vld [vmem:[#allocation2 + $0x8] sm:$0xff]   ;;  %v1021_v9 = vld [vmem:[#allocation2 + $0x10] sm:$0xff]   ;;  %v1151_v45 = vmov 2475754826  }
  0x39   :  { %931 = vmatpush3.bf16.msra.mxu0 %v1016_v3  ;;  %951 = vmatpush3.bf16.msra.mxu1 %v1017_v4  ;;  %v1022_v10 = vld [vmem:[#allocation5 + $0x18] sm:$0xff]   ;;  %v1024_v12 = vld [vmem:[#allocation5 + $0x20] sm:$0xff]   ;;  %v1026_v14 = vld [vmem:[#allocation5 + $0x28] sm:$0xff]   ;;  %v1152_v47 = vmov 2131351028  }
  0x3a   :  { %932 = vmatprep.subr.bf16.mxu0 %v1148_v5  ;;  %952 = vmatprep.subr.bf16.mxu1 %v1148_v5  ;;  %v1023_v11 = vld [vmem:[#allocation2 + $0x18] sm:$0xff]   ;;  %v1025_v13 = vld [vmem:[#allocation2 + $0x20] sm:$0xff]   ;;  %v1027_v15 = vld [vmem:[#allocation2 + $0x28] sm:$0xff]   ;;  %v1153_v49 = vmov 2102212464  }
  0x3b   :  { %946 = vmatprep.mubr.msk.bf16.mxu0 %vm1149_vm0, %v1148_v5  ;;  %966 = vmatprep.mubr.msk.bf16.mxu1 %vm1149_vm0, %v1148_v5  ;;  %v1028_v16 = vld [vmem:[#allocation5 + $0x30] sm:$0xff]   ;;  %v1030_v18 = vld [vmem:[#allocation5 + $0x38] sm:$0xff]   ;;  %v860_v20 = vld [vmem:[%s1386_s1] ss:$0 sm:$0xff]  ;;  %v1154_v51 = vmov 920167782  }
  0x3c   :  { %79 = vperm.xlu0 %1015, %v70_v2   ;;  %v1029_v17 = vld [vmem:[#allocation2 + $0x30] sm:$0xff]   ;;  %v1031_v19 = vld [vmem:[#allocation2 + $0x38] sm:$0xff]   ;;  %v1155_v58 = vmov 1326507024  }
  0x3d   :  { %933 = vmatpush3.bf16.msra.mxu0 %v1018_v6  ;;  %953 = vmatpush3.bf16.msra.mxu1 %v1019_v7 }
  0x3e   :  { %934 = vmatprep.subr.bf16.mxu0 %v1148_v5  ;;  %954 = vmatprep.subr.bf16.mxu1 %v1148_v5 }
  0x41   :  { %935 = vmatpush3.bf16.msra.mxu0 %v1020_v8  ;;  %955 = vmatpush3.bf16.msra.mxu1 %v1021_v9 }
  0x42   :  { %936 = vmatprep.subr.bf16.mxu0 %v1148_v5  ;;  %956 = vmatprep.subr.bf16.mxu1 %v1148_v5 }
  0x45   :  { %937 = vmatpush3.bf16.msra.mxu0 %v1022_v10  ;;  %957 = vmatpush3.bf16.msra.mxu1 %v1023_v11 }
  0x46   :  { %938 = vmatprep.subr.bf16.mxu0 %v1148_v5  ;;  %958 = vmatprep.subr.bf16.mxu1 %v1148_v5 }
  0x49   :  { %939 = vmatpush3.bf16.msra.mxu0 %v1024_v12  ;;  %959 = vmatpush3.bf16.msra.mxu1 %v1025_v13 }
  0x4a   :  { %940 = vmatprep.subr.bf16.mxu0 %v1148_v5  ;;  %960 = vmatprep.subr.bf16.mxu1 %v1148_v5 }
  0x4d   :  { %941 = vmatpush3.bf16.msra.mxu0 %v1026_v14  ;;  %961 = vmatpush3.bf16.msra.mxu1 %v1027_v15 }
  0x4e   :  { %942 = vmatprep.subr.bf16.mxu0 %v1148_v5  ;;  %962 = vmatprep.subr.bf16.mxu1 %v1148_v5 }
  0x51   :  { %943 = vmatpush3.bf16.msra.mxu0 %v1028_v16  ;;  %963 = vmatpush3.bf16.msra.mxu1 %v1029_v17 }
  0x52   :  { %944 = vmatprep.subr.bf16.mxu0 %v1148_v5  ;;  %964 = vmatprep.subr.bf16.mxu1 %v1148_v5 }
  0x55   :  { %945 = vmatpush3.bf16.msra.mxu0 %v1030_v18  ;;  %965 = vmatpush3.bf16.msra.mxu1 %v1031_v19 }
  0x56   :  { %970 = vmatprep.subr.bf16.mxu0 %v1148_v5 }
  0xb7   :  { %v75_v21 = vpop.permute.xlu0 %74 }
  0xb8   :  { %v1281_v22 = vmul.f32 %v860_v20, %v75_v21 }
  0xba   :  { %v90_v23 = vand.u32 2147483647, %v1281_v22  ;;  %v93_v24 = vand.u32 2139095040, %v1281_v22  ;;  %vm92_vm15 = vcmp.lt.s32.totalorder %v1281_v22, 0 }
  0xbb   :  { %v80_v25 = vpop.permute.xlu0 %79 }
  0xbc   :  { %v94_v26 = vshrl.u32 %v93_v24, 23  ;;  %v1285_v27 = vmul.f32 %v860_v20, %v80_v25  ;;  %v97_v28 = vand.u32 8388607, %v90_v23 }
  0xbe   :  { %v861_v29 = vadd.s32 4294967169, %v94_v26  ;;  %v197_v30 = vand.u32 2139095040, %v1285_v27  ;;  %v98_v32 = vor.u32 8388608, %v97_v28  ;;  %v194_v34 = vand.u32 2147483647, %v1285_v27 }
  0xc0   :  { %v100_v31 = vadd.s32 1, %v861_v29  ;;  %v198_v33 = vshrl.u32 %v197_v30, 23  ;;  %v1291_v39 = vshll.u32 %v98_v32, 8  ;;  %v201_v43 = vand.u32 8388607, %v194_v34 }
  0xc2   :  { %vm101_vm1 = vcmp.gt.s32.totalorder %v100_v31, 0  ;;  %v865_v36 = vadd.s32 4294967169, %v198_v33  ;;  %v202_v10 = vor.u32 8388608, %v201_v43 }
  0xc3   :  { %v102_v35 = vsel %vm101_vm1, %v100_v31, 0  ;;  %vm1339_vm1 = vcmp.le.f32.partialorder %v90_v23, 0.7853982 }
  0xc4   :  { %v103_v37 = vshrl.u32 %v102_v35, 5  ;;  %v104_v38 = vand.u32 31, %v102_v35  ;;  %v204_v44 = vadd.s32 1, %v865_v36  ;;  %v242_v25 = vshll.u32 %v202_v10, 8 }
  0xc6   :  { %v105_v40 = vsub.s32 32, %v104_v38  ;;  %v107_v42 = vshll.u32 %v1150_v41, %v104_v38  ;;  %v110_v46 = vshll.u32 %v1151_v45, %v104_v38  ;;  %v113_v48 = vshll.u32 %v1152_v47, %v104_v38 }
  0xc7   :  { %v116_v50 = vshll.u32 %v1153_v49, %v104_v38  ;;  %v119_v52 = vshll.u32 %v1154_v51, %v104_v38  ;;  %vm122_vm2 = vcmp.lt.s32.totalorder %v103_v37, 1  ;;  %vm124_vm3 = vcmp.lt.s32.totalorder %v103_v37, 3 }
  0xc8   :  { %v108_v53 = vshrl.u32 %v1151_v45, %v105_v40  ;;  %v111_v54 = vshrl.u32 %v1152_v47, %v105_v40  ;;  %v114_v55 = vshrl.u32 %v1153_v49, %v105_v40  ;;  %v106_v56 = vshrl.u32 %v1150_v41, %v105_v40 }
  0xc9   :  { %v117_v57 = vshrl.u32 %v1154_v51, %v105_v40  ;;  %v120_v59 = vshrl.u32 %v1155_v58, %v105_v40  ;;  %vm205_vm4 = vcmp.gt.s32.totalorder %v204_v44, 0  ;;  %vm125_vm5 = vcmp.lt.s32.totalorder %v103_v37, 4 }
  0xca   :  { %v109_v60 = vor.u32 %v108_v53, %v107_v42  ;;  %v112_v61 = vor.u32 %v111_v54, %v110_v46  ;;  %v115_v62 = vor.u32 %v114_v55, %v113_v48  ;;  %v206_v1 = vsel %vm205_vm4, %v204_v44, 0 }
  0xcb   :  { %v118_v63 = vor.u32 %v117_v57, %v116_v50  ;;  %v121_v0 = vor.u32 %v120_v59, %v119_v52  ;;  %vm123_vm6 = vcmp.lt.s32.totalorder %v103_v37, 2  ;;  %v208_v13 = vand.u32 31, %v206_v1 }
  0xcc   :  { %v126_v2 = vsel %vm122_vm2, %v106_v56, %v109_v60  ;;  %v127_v3 = vsel %vm125_vm5, %v115_v62, 2102212464  ;;  %v130_v4 = vsel %vm122_vm2, %v109_v60, %v112_v61  ;;  %v134_v6 = vsel %vm122_vm2, %v112_v61, %v115_v62 }
  0xcd   :  { %v128_v7 = vsel %vm124_vm3, %v112_v61, %v127_v3  ;;  %v131_v8 = vsel %vm125_vm5, %v118_v63, 920167782  ;;  %v135_v9 = vsel %vm125_vm5, %v121_v0, 1326507024  ;;  %v207_v21 = vshrl.u32 %v206_v1, 5 }
  0xce   :  { %v132_v11 = vsel %vm124_vm3, %v115_v62, %v131_v8  ;;  %v136_v12 = vsel %vm124_vm3, %v118_v63, %v135_v9  ;;  %v129_v14 = vsel %vm123_vm6, %v126_v2, %v128_v7  ;;  %v209_v24 = vsub.s32 32, %v208_v13 }
  0xcf   :  { %v133_v15 = vsel %vm123_vm6, %v130_v4, %v132_v11  ;;  %v137_v16 = vsel %vm123_vm6, %v134_v6, %v136_v12  ;;  %v145_v26 = vmul.u32 %v1291_v39, %v129_v14  ;;  %v211_v28 = vshll.u32 %v1150_v41, %v208_v13 }
  0xd0   :  { %v1304_v17 = vmul.u32.u64.low %v1291_v39, %v137_v16  ;;  %v1305_v18 = vmul.u32.u64.high %v1291_v39, %v137_v16, %v1304_v17  ;;  %v1308_v19 = vmul.u32.u64.low %v1291_v39, %v133_v15  ;;  %v1309_v20 = vmul.u32.u64.high %v1291_v39, %v133_v15, %v1308_v19 }
  0xd1   :  { %v214_v29 = vshll.u32 %v1151_v45, %v208_v13  ;;  %v217_v30 = vshll.u32 %v1152_v47, %v208_v13  ;;  %v212_v31 = vshrl.u32 %v1151_v45, %v209_v24  ;;  %v215_v32 = vshrl.u32 %v1152_v47, %v209_v24 }
  0xd2   :  { %v218_v33 = vshrl.u32 %v1153_v49, %v209_v24  ;;  %v220_v35 = vshll.u32 %v1153_v49, %v208_v13  ;;  %vm147_vm7 = vc.u32 %v1305_v18, %v1308_v19  ;;  %v148_v36 = vadd.s32 1, %v1309_v20 }
  0xd3   :  { %v221_v37 = vshrl.u32 %v1154_v51, %v209_v24  ;;  %v223_v38 = vshll.u32 %v1154_v51, %v208_v13  ;;  %v213_v40 = vor.u32 %v212_v31, %v211_v28  ;;  %v216_v42 = vor.u32 %v215_v32, %v214_v29 }
  0xd4   :  { %v219_v43 = vor.u32 %v218_v33, %v217_v30  ;;  %v224_v44 = vshrl.u32 %v1155_v58, %v209_v24  ;;  %v149_v39 = vsel %vm147_vm7, %v148_v36, %v1309_v20  ;;  %vm226_vm8 = vcmp.lt.s32.totalorder %v207_v21, 1 }
  0xd5   :  { %v222_v46 = vor.u32 %v221_v37, %v220_v35  ;;  %vm229_vm9 = vcmp.lt.s32.totalorder %v207_v21, 4  ;;  %v150_v45 = vadd.s32 %v149_v39, %v145_v26  ;;  %vm228_vm10 = vcmp.lt.s32.totalorder %v207_v21, 3 }
  0xd6   :  { %v225_v47 = vor.u32 %v224_v44, %v223_v38  ;;  %v231_v48 = vsel %vm229_vm9, %v219_v43, 2102212464  ;;  %v210_v49 = vshrl.u32 %v1150_v41, %v209_v24  ;;  %v234_v50 = vsel %vm226_vm8, %v213_v40, %v216_v42 }
  0xd7   :  { %v235_v52 = vsel %vm229_vm9, %v222_v46, 920167782  ;;  %v238_v53 = vsel %vm226_vm8, %v216_v42, %v219_v43  ;;  %v151_v54 = vadd.s32 536870912, %v150_v45  ;;  %vm227_vm11 = vcmp.lt.s32.totalorder %v207_v21, 2 }
  0xd8   :  { %v236_v51 = vsel %vm228_vm10, %v219_v43, %v235_v52  ;;  %v239_v55 = vsel %vm229_vm9, %v225_v47, 1326507024  ;;  %v230_v56 = vsel %vm226_vm8, %v210_v49, %v213_v40  ;;  %v232_v57 = vsel %vm228_vm10, %v216_v42, %v231_v48 }
  0xd9   :  { %v237_v58 = vsel %vm227_vm11, %v234_v50, %v236_v51  ;;  %v240_v59 = vsel %vm228_vm10, %v222_v46, %v239_v55  ;;  %v1319_v60 = vshrl.u32 %v151_v54, 30  ;;  %v233_v2 = vsel %vm227_vm11, %v230_v56, %v232_v57 }
  0xda   :  { %v241_v61 = vsel %vm227_vm11, %v238_v53, %v240_v59  ;;  %v1321_v62 = vmul.u32.u64.low %v242_v25, %v237_v58  ;;  %v1322_v63 = vmul.u32.u64.high %v242_v25, %v237_v58, %v1321_v62  ;;  %v249_v6 = vmul.u32 %v242_v25, %v233_v2 }
  0xdb   :  { %v1324_v0 = vmul.u32.u64.low %v242_v25, %v241_v61  ;;  %v1325_v1 = vmul.u32.u64.high %v242_v25, %v241_v61, %v1324_v0  ;;  %v153_v41 = vshll.u32 %v1319_v60, 30  ;;  %v146_v20 = vadd.s32 %v1308_v19, %v1305_v18 }
  0xdc   :  { %v252_v4 = vadd.s32 1, %v1322_v63  ;;  %v176_v54 = vsub.s32 4, %v1319_v60  ;;  %vm196_vm2 = vcmp.lt.s32.totalorder %v1285_v27, 0  ;;  %vm195_vm3 = vcmp.le.f32.partialorder %v194_v34, 0.7853982 }
  0xdd   :  { %v154_v3 = vsub.s32 %v150_v45, %v153_v41  ;;  %vm251_vm12 = vc.u32 %v1325_v1, %v1321_v62  ;;  %v250_v43 = vadd.s32 %v1321_v62, %v1325_v1 }
  0xde   :  { %v253_v8 = vsel %vm251_vm12, %v252_v4, %v1322_v63  ;;  %v177_v23 = vsel %vm92_vm15, %v176_v54, %v1319_v60 }
  0xdf   :  { %v156_v7 = vsub.s32 0, %v154_v3  ;;  %v254_v9 = vadd.s32 %v253_v8, %v249_v6  ;;  %v179_v61 = vsel %vm1339_vm1, 0, %v177_v23 }
  0xe0   :  { %v183_v1 = vadd.s32 3, %v179_v61 }
  0xe1   :  { %v862_v10 = vmin.u32 %v156_v7, %v154_v3  ;;  %v255_v11 = vadd.s32 536870912, %v254_v9 }
  0xe2   :  { %v184_v4 = vand.u32 3, %v183_v1 }
  0xe3   :  { %v158_v12 = vclz %v862_v10  ;;  %v256_v13 = vshrl.u32 %v255_v11, 30 }
  0xe4   :  { %vm186_vm6 = vcmp.eq.s32.totalorder %v184_v4, 0  ;;  %vm189_vm7 = vcmp.eq.s32.totalorder %v184_v4, 2  ;;  %vm185_vm10 = vcmp.lt.s32.totalorder %v184_v4, 2 }
  0xe5   :  { %v863_v14 = vadd.s32 4294967294, %v158_v12  ;;  %v257_v15 = vshll.u32 %v256_v13, 30  ;;  %v280_v57 = vsub.s32 4, %v256_v13 }
  0xe7   :  { %vm864_vm13 = vcmp.lt.s32.totalorder %v863_v14, 0  ;;  %v258_v17 = vsub.s32 %v254_v9, %v257_v15  ;;  %v281_v62 = vsel %vm196_vm2, %v280_v57, %v256_v13  ;;  %v894_v57 = vld [vmem:[%s1391_s6] ss:$0 sm:$0xff] }
  0xe8   :  { %v161_v16 = vsel %vm864_vm13, 0, %v863_v14  ;;  %v283_v0 = vsel %vm195_vm3, 0, %v281_v62 }
  0xe9   :  { %v162_v21 = vsub.s32 32, %v161_v16  ;;  %v166_v24 = vsub.s32 4294967266, %v161_v16  ;;  %v260_v25 = vsub.s32 0, %v258_v17  ;;  %v163_v26 = vshll.u32 %v154_v3, %v161_v16 }
  0xea   :  { %v287_v60 = vadd.s32 3, %v283_v0  ;;  %v392_v3 = vand.u32 3, %v179_v61  ;;  %v495_v8 = vand.u32 3, %v283_v0 }
  0xeb   :  { %v164_v28 = vshrl.u32 %v146_v20, %v162_v21  ;;  %v167_v29 = vadd.s32 127, %v166_v24  ;;  %v866_v30 = vmin.u32 %v260_v25, %v258_v17 }
  0xec   :  { %v288_v34 = vand.u32 3, %v287_v60  ;;  %vm394_vm4 = vcmp.eq.s32.totalorder %v392_v3, 0  ;;  %vm397_vm5 = vcmp.eq.s32.totalorder %v392_v3, 2  ;;  %vm393_vm8 = vcmp.lt.s32.totalorder %v392_v3, 2 }
  0xed   :  { %v165_v31 = vor.u32 %v164_v28, %v163_v26  ;;  %v168_v32 = vshll.u32 %v167_v29, 23  ;;  %v262_v33 = vclz %v866_v30  ;;  %vm497_vm9 = vcmp.eq.s32.totalorder %v495_v8, 0 }
  0xee   :  { %vm500_vm11 = vcmp.eq.s32.totalorder %v495_v8, 2  ;;  %vm290_vm12 = vcmp.eq.s32.totalorder %v288_v34, 0  ;;  %vm293_vm13 = vcmp.eq.s32.totalorder %v288_v34, 2 }
  0xef   :  { %v169_v35 = vor.u32 4788187, %v168_v32  ;;  %v867_v36 = vadd.s32 4294967294, %v262_v33  ;;  %v172_v38 = vcvt.s32.f32 %v165_v31 }
  0xf1   :  { %v170_v37 = vand.u32 2147483647, %v169_v35  ;;  %vm868_vm14 = vcmp.lt.s32.totalorder %v867_v36, 0  ;;  %v1032_v35 = vld [vmem:[#allocation7] sm:$0xff]  }
  0xf2   :  { %v265_v42 = vsel %vm868_vm14, 0, %v867_v36  ;;  %vm496_vm14 = vcmp.lt.s32.totalorder %v495_v8, 2 }
  0xf3   :  { %v173_v40 = vmul.f32 %v172_v38, %v170_v37  ;;  %v266_v18 = vsub.s32 32, %v265_v42  ;;  %v270_v19 = vsub.s32 4294967266, %v265_v42  ;;  %v267_v39 = vshll.u32 %v258_v17, %v265_v42  ;;  %v1033_v38 = vld [vmem:[#allocation7 + $0x8] sm:$0xff]  }
  0xf4   :  { %v1037_v42 = vld [vmem:[#allocation7 + $0x28] sm:$0xff]  }
  0xf5   :  { %v174_v44 = vxor.u32 2147483648, %v173_v40  ;;  %v268_v46 = vshrl.u32 %v250_v43, %v266_v18  ;;  %v271_v45 = vadd.s32 127, %v270_v19  ;;  %v1038_v43 = vld [vmem:[#allocation7 + $0x30] sm:$0xff]   ;;  %v1039_v18 = vld [vmem:[#allocation7 + $0x38] sm:$0xff]  }
  0xf7   :  { %v175_v47 = vsel %vm92_vm15, %v174_v44, %v173_v40  ;;  %v269_v49 = vor.u32 %v268_v46, %v267_v39  ;;  %v272_v50 = vshll.u32 %v271_v45, 23  ;;  %vm289_vm15 = vcmp.lt.s32.totalorder %v288_v34, 2  ;;  %v1036_v40 = vld [vmem:[#allocation7 + $0x20] sm:$0xff]  }
  0xf8   :  { %v178_v52 = vsel %vm1339_vm1, %v1281_v22, %v175_v47  ;;  %vm182_vm1 = vweird.f32 %v1281_v22  ;;  %v1034_v22 = vld [vmem:[#allocation7 + $0x10] sm:$0xff]   ;;  %v893_v39 = vld [vmem:[%s1389_s4] ss:$0 sm:$0xff]  ;;  %s1156_s4 = smov [#allocation8]  }
  0xf9   :  { %v273_v53 = vor.u32 4788187, %v272_v50  ;;  %1040 = vcosq.f32 %v178_v52  ;;  %v276_v55 = vcvt.s32.f32 %v269_v49  ;;  %s847_s21 = sshll.u32 %s1156_s4, 4  ;;  %s848_s21 = int_to_ptr.vmem [resolvable:$true] %s847_s21 }
  0xfa   :  { %1042 = vsinq.f32 %v178_v52  ;;  %s1114_s22 = scalar_lea.vmem %s848_s21, 256  ;;  %p1119_p11 = scmp.lt.s32.totalorder %s848_s21, %s848_s21 }
  0xfb   :  { %v274_v51 = vand.u32 2147483647, %v273_v53  ;;  %p1115_p10 = scmp.ne.s32.totalorder %s848_s21, %s1114_s22  ;;  %p1120_p12 = scmp.lt.s32.totalorder %s1114_s22, %s1114_s22 }
  0xfd   :  { %v277_v56 = vmul.f32 %v276_v55, %v274_v51  ;;  %p1121_p13 = por %p1120_p12, %p1119_p11 }
  0xff   :  { %v278_v58 = vxor.u32 2147483648, %v277_v56  ;;  %p1122_p0 = pnand %p1121_p13, %p1115_p10 }
 0x101   :  { %v279_v59 = vsel %vm196_vm2, %v278_v58, %v277_v56  ;;  %vm286_vm2 = vweird.f32 %v1285_v27 }
 0x102   :  { %v282_v63 = vsel %vm195_vm3, %v1285_v27, %v279_v59  ;;  %v1035_v27 = vld [vmem:[#allocation7 + $0x18] sm:$0xff]  }
 0x103   :  { %1044 = vcosq.f32 %v282_v63  ;;  %v1041_v41 = vpop.eup %1040 }
 0x104   :  { %1046 = vsinq.f32 %v282_v63  ;;  %v1043_v2 = vpop.eup %1042  ;;  %v190_v7 = vxor.u32 2147483648, %v1041_v41 }
 0x105   :  { %v187_v6 = vxor.u32 2147483648, %v1043_v2 }
 0x106   :  { %v399_v11 = vsel %vm397_vm5, %v190_v7, %v1043_v2  ;;  %v191_v13 = vsel %vm189_vm7, %v190_v7, %v1043_v2 }
 0x107   :  { %v396_v10 = vsel %vm394_vm4, %v1041_v41, %v187_v6  ;;  %v188_v12 = vsel %vm186_vm6, %v1041_v41, %v187_v6 }
 0x108   :  { %v400_v17 = vsel %vm393_vm8, %v396_v10, %v399_v11  ;;  %v192_v21 = vsel %vm185_vm10, %v188_v12, %v191_v13 }
 0x109   :  { %v401_v30 = vsel %vm182_vm1, nan, %v400_v17  ;;  %v193_v32 = vsel %vm182_vm1, nan, %v192_v21 }
 0x10d   :  { %v1045_v9 = vpop.eup %1044 }
 0x10e   :  { %v1047_v14 = vpop.eup %1046  ;;  %v294_v15 = vxor.u32 2147483648, %v1045_v9 }
 0x10f   :  { %v291_v16 = vxor.u32 2147483648, %v1047_v14 }
 0x110   :  { %v502_v20 = vsel %vm500_vm11, %v294_v15, %v1047_v14  ;;  %v295_v24 = vsel %vm293_vm13, %v294_v15, %v1047_v14 }
 0x111   :  { %v499_v25 = vsel %vm497_vm9, %v1045_v9, %v291_v16  ;;  %v292_v26 = vsel %vm290_vm12, %v1045_v9, %v291_v16 }
 0x112   :  { %v503_v28 = vsel %vm496_vm14, %v499_v25, %v502_v20  ;;  %v296_v29 = vsel %vm289_vm15, %v292_v26, %v295_v24 }
 0x113   :  { %v504_v31 = vsel %vm286_vm2, nan, %v503_v28  ;;  %v297_v33 = vsel %vm286_vm2, nan, %v296_v29 }
 0x114   :  { %v505_v36 = vpack.c.bf16 %v504_v31, %v401_v30  ;;  %v298_v37 = vpack.c.bf16 %v297_v33, %v193_v32 }
 0x116   :  { %947 = vmatmul.mubr.bf16.vlgmr.msra.gmra.mrb[0].mxu0 %v505_v36  ;;  %967 = vmatmul.mubr.bf16.vlgmr.msra.gmra.mrb[0].mxu1 %v298_v37 }
 0x117   :  { %971 = vmatpush3.bf16.msra.mxu0 %v1032_v35  ;;  %986 = vmatprep.mubr.msk.bf16.mxu0 %vm1149_vm0, %v1148_v5 }
 0x118   :  { %972 = vmatprep.subr.bf16.mxu0 %v1148_v5 }
 0x11b   :  { %973 = vmatpush3.bf16.msra.mxu0 %v1033_v38 }
 0x11c   :  { %974 = vmatprep.subr.bf16.mxu0 %v1148_v5 }
 0x11f   :  { %975 = vmatpush3.bf16.msra.mxu0 %v1034_v22 }
 0x120   :  { %976 = vmatprep.subr.bf16.mxu0 %v1148_v5 }
 0x123   :  { %977 = vmatpush3.bf16.msra.mxu0 %v1035_v27 }
 0x124   :  { %978 = vmatprep.subr.bf16.mxu0 %v1148_v5 }
 0x127   :  { %979 = vmatpush3.bf16.msra.mxu0 %v1036_v40 }
 0x128   :  { %980 = vmatprep.subr.bf16.mxu0 %v1148_v5 }
 0x12b   :  { %981 = vmatpush3.bf16.msra.mxu0 %v1037_v42 }
 0x12c   :  { %982 = vmatprep.subr.bf16.mxu0 %v1148_v5 }
 0x12f   :  { %983 = vmatpush3.bf16.msra.mxu0 %v1038_v43 }
 0x130   :  { %984 = vmatprep.subr.bf16.mxu0 %v1148_v5 }
 0x133   :  { %985 = vmatpush3.bf16.msra.mxu0 %v1039_v18 }
 0x1e9   :  { %v620_v19 = vpop.f32.mrb[0].mxu0  ;;  %v709_v44 = vpop.f32.mrb[0].mxu1 }
 0x1ea   :  { %v710_v46 = vadd.f32 %v709_v44, %v620_v19  ;;  %v948_v45 = vpop.f32.mrb[1].mxu0  ;;  %v968_v47 = vpop.f32.mrb[1].mxu1 }
 0x1eb   :  { %v623_v48 = vpop.f32.mrb[2].mxu0  ;;  %v712_v49 = vpop.f32.mrb[2].mxu1 }
 0x1ec   :  { %v723_v50 = vadd.f32 %v893_v39, %v710_v46  ;;  %v713_v52 = vadd.f32 %v712_v49, %v623_v48  ;;  %v949_v53 = vpop.f32.mrb[3].mxu0  ;;  %v969_v54 = vpop.f32.mrb[3].mxu1 }
 0x1ee   :  { %v724_v51 = vadd.f32 %v893_v39, %v713_v52  ;;  %v725_v55 = vmax.f32 %v723_v50, 0.0 }
 0x1f0   :  { %v726_v5 = vmax.f32 %v724_v51, 0.0 }
 0x1f2   :  { %v727_v56 = vpack.c.bf16 %v726_v5, %v725_v55 }
 0x1f4   :  { %987 = vmatmul.mubr.bf16.vlgmr.msra.gmra.mrb[4].mxu0 %v727_v56 }
 0x2c7   :  { %v833_v23 = vpop.f32.mrb[4].mxu0 }
 0x2c8   :  { %v834_v58 = vadd.f32 %v894_v57, %v833_v23  ;;  %v988_v59 = vpop.f32.mrb[5].mxu0 }
 0x2c9   :  { %v836_v61 = vpop.f32.mrb[6].mxu0 }
 0x2ca   :  { %840 = vst [vmem:[#allocation8] sm:$0xff] %v834_v58  ;;  %v837_v62 = vadd.f32 %v894_v57, %v836_v61  ;;  %v989_v63 = vpop.f32.mrb[7].mxu0 }
 0x2cc   :  { %841 = vst [vmem:[#allocation8 + $0x8] sm:$0xff] %v837_v62 }
 0x2cd   :  { %1125 = shalt.err (!%p1122_p0)
}
 0x2ce   :  { %s1126_s24 = scalar_lea.hbm %s1392_s7, 256 }
 0x2cf   :  { %p1127_p1 = scmp.ne.s32.totalorder %s1392_s7, %s1126_s24  ;;  %p1130_p2 = scmp.lt.u32.totalorder %s1126_s24, %s1392_s7 }
 0x2d1   :  { %p1132_p3 = pnand %p1130_p2, %p1127_p1 }
 0x2d3   :  { %1135 = shalt.err (!%p1132_p3)
}
 0x2d4   :  { %s1157_s29 = smov 128   ;;  %s1158_s30 = smov 8  }
 0x2d5   :  { %853 = dma.vmem_to_hbm [thread:$0]  %s848_s21, 256, %s1392_s7, [#allocation4], %s1157_s29, %s1157_s29, %s1158_s30  }
 0x2d6   :  { %1140 = dma.done.wait [#allocation4], 256  }
 0x2d7   :  { %1141 = vsyncadd [#allocation4], 4294967040 }
 0x2d8   :  { %857 = vsyncpa [#allocation3], 1 }
 0x2d9   :  { %858 = vsyncpa [#allocation6], 1 }
 0x2da   :  { %859 = vsyncpa [#allocation4], 1 }

// kernel: tpu_custom_call.1
= control target key start
LH: loop header
LB: loop body
LE: loop exit
PB: predicated region body
PF: predicated region fallthrough
CT: control target
= control target key end

     0   :  { %12 = vsyncpa [#allocation3], 0  ;;  %s1385_s0 = inlined_call_operand.vmem [shape: f32[16,1], index: 0, kind: input, shape index: {}]   ;;  %s1386_s1 = inlined_call_operand.vmem [shape: f32[1,128], index: 1, kind: input, shape index: {}]   ;;  %s1387_s2 = inlined_call_operand.hbm [shape: bf16[128,128], index: 2, kind: input, shape index: {}]   ;;  %s1388_s3 = inlined_call_operand.hbm [shape: bf16[128,128], index: 3, kind: input, shape index: {}]   ;;  %s1389_s4 = inlined_call_operand.vmem [shape: f32[1,128], index: 4, kind: input, shape index: {}]   ;;  %s1390_s5 = inlined_call_operand.hbm [shape: bf16[128,128], index: 5, kind: input, shape index: {}]   ;;  %s1391_s6 = inlined_call_operand.vmem [shape: f32[1,128], index: 6, kind: input, shape index: {}]   ;;  %s1392_s7 = inlined_call_operand.hbm [shape: f32[16,128], index: 7, kind: output, shape index: {}]  }
   0x1   :  { %13 = vsyncpa [#allocation6], 0 }
   0x2   :  { %14 = vsyncpa [#allocation4], 0  ;;  %s1142_s24 = smov [#allocation5]   ;;  %s1143_s26 = smov [#allocation2]  }
   0x3   :  { %s36_s25 = sshll.u32 %s1142_s24, 4  ;;  %s24_s27 = sshll.u32 %s1143_s26, 4  ;;  %s37_s25 = int_to_ptr.vmem [resolvable:$true] %s36_s25  ;;  %s1199_s27 = int_to_ptr.vmem [resolvable:$true] %s24_s27 }
   0x4   :  { %s1048_s30 = scalar_lea.hbm %s1388_s3, 1024 }
   0x5   :  { %p1049_p0 = scmp.ne.s32.totalorder %s1388_s3, %s1048_s30  ;;  %p1052_p1 = scmp.lt.u32.totalorder %s1048_s30, %s1388_s3 }
   0x7   :  { %p1054_p2 = pnand %p1052_p1, %p1049_p0 }
   0x9   :  { %1057 = shalt.err (!%p1054_p2)
}
   0xa   :  { %s1058_s12 = scalar_lea.vmem %s37_s25, 1024  ;;  %p1063_p4 = scmp.lt.s32.totalorder %s37_s25, %s37_s25 }
   0xb   :  { %p1059_p3 = scmp.ne.s32.totalorder %s37_s25, %s1058_s12  ;;  %p1064_p5 = scmp.lt.s32.totalorder %s1058_s12, %s1058_s12 }
   0xd   :  { %p1065_p6 = por %p1064_p5, %p1063_p4 }
   0xf   :  { %p1066_p7 = pnand %p1065_p6, %p1059_p3 }
  0x11   :  { %1069 = shalt.err (!%p1066_p7)
}
  0x12   :  { %s1144_s13 = smov 64   ;;  %s1145_s14 = smov 4  }
  0x13   :  { %42 = dma.hbm_to_vmem [thread:$0]  %s1388_s3, 1024, %s37_s25, [#allocation6], %s1144_s13, %s1144_s13, %s1145_s14  }
  0x14   :  { %s1070_s19 = scalar_lea.hbm %s1387_s2, 1024 }
  0x15   :  { %p1071_p8 = scmp.ne.s32.totalorder %s1387_s2, %s1070_s19  ;;  %p1074_p9 = scmp.lt.u32.totalorder %s1070_s19, %s1387_s2 }
  0x17   :  { %p1076_p10 = pnand %p1074_p9, %p1071_p8 }
  0x19   :  { %1079 = shalt.err (!%p1076_p10)
}
  0x1a   :  { %s1080_s24 = scalar_lea.vmem %s1199_s27, 1024  ;;  %p1085_p12 = scmp.lt.s32.totalorder %s1199_s27, %s1199_s27 }
  0x1b   :  { %p1081_p11 = scmp.ne.s32.totalorder %s1199_s27, %s1080_s24  ;;  %p1086_p13 = scmp.lt.s32.totalorder %s1080_s24, %s1080_s24 }
  0x1d   :  { %p1087_p0 = por %p1086_p13, %p1085_p12 }
  0x1f   :  { %p1088_p1 = pnand %p1087_p0, %p1081_p11 }
  0x21   :  { %1091 = shalt.err (!%p1088_p1)
}
  0x22   :  { %30 = dma.hbm_to_vmem [thread:$0]  %s1387_s2, 1024, %s1199_s27, [#allocation3], %s1144_s13, %s1144_s13, %s1145_s14  }
  0x23   :  { %s1146_s26 = smov [#allocation7]   ;;  %s1092_s8 = scalar_lea.hbm %s1390_s5, 1024 }
  0x24   :  { %s50_s28 = sshll.u32 %s1146_s26, 4  ;;  %p1093_p2 = scmp.ne.s32.totalorder %s1390_s5, %s1092_s8  ;;  %s51_s28 = int_to_ptr.vmem [resolvable:$true] %s50_s28 }
  0x25   :  { %p1096_p3 = scmp.lt.u32.totalorder %s1092_s8, %s1390_s5 }
  0x27   :  { %p1098_p4 = pnand %p1096_p3, %p1093_p2 }
  0x29   :  { %1101 = shalt.err (!%p1098_p4)
}
  0x2a   :  { %s1102_s15 = scalar_lea.vmem %s51_s28, 1024  ;;  %p1107_p6 = scmp.lt.s32.totalorder %s51_s28, %s51_s28 }
  0x2b   :  { %p1103_p5 = scmp.ne.s32.totalorder %s51_s28, %s1102_s15  ;;  %p1108_p7 = scmp.lt.s32.totalorder %s1102_s15, %s1102_s15 }
  0x2d   :  { %p1109_p8 = por %p1108_p7, %p1107_p6 }
  0x2f   :  { %p1110_p9 = pnand %p1109_p8, %p1103_p5 }
  0x31   :  { %1113 = shalt.err (!%p1110_p9)
}
  0x32   :  { %56 = dma.hbm_to_vmem [thread:$0]  %s1390_s5, 1024, %s51_s28, [#allocation6], %s1144_s13, %s1144_s13, %s1145_s14  }
  0x33   :  { %1136 = dma.done.wait [#allocation3], 1024  }
  0x34   :  { %1137 = vsyncadd [#allocation3], 4294966272 }
  0x35   :  { %1138 = dma.done.wait [#allocation6], 2048  }
  0x36   :  { %1139 = vsyncadd [#allocation6], 4294965248  ;;  %v1147_v0 = vmov 0   ;;  %v69_v1 = vld [vmem:[%s1385_s0] sm:$0xff]  ;;  %v70_v2 = vld [vmem:[%s1385_s0 + $0x8] sm:$0xff]  ;;  %v1148_v5 = vmov 0.0  }
  0x37   :  { %1015 = vset.pattern.permute.xlu0 %v1147_v0  ;;  %v1016_v3 = vld [vmem:[#allocation5] sm:$0xff]   ;;  %930 = vmatprep.subr.bf16.mxu0 %v1148_v5  ;;  %v1018_v6 = vld [vmem:[#allocation5 + $0x8] sm:$0xff]   ;;  %v1020_v8 = vld [vmem:[#allocation5 + $0x10] sm:$0xff]   ;;  %vm1149_vm0 = vmmov 0   ;;  %v1150_v41 = vmov 683565275  }
  0x38   :  { %74 = vperm.xlu0 %1015, %v69_v1   ;;  %v1017_v4 = vld [vmem:[#allocation2] sm:$0xff]   ;;  %950 = vmatprep.subr.bf16.mxu1 %v1148_v5  ;;  %v1019_v7 = vld [vmem:[#allocation2 + $0x8] sm:$0xff]   ;;  %v1021_v9 = vld [vmem:[#allocation2 + $0x10] sm:$0xff]   ;;  %v1151_v45 = vmov 2475754826  }
  0x39   :  { %931 = vmatpush3.bf16.msra.mxu0 %v1016_v3  ;;  %951 = vmatpush3.bf16.msra.mxu1 %v1017_v4  ;;  %v1022_v10 = vld [vmem:[#allocation5 + $0x18] sm:$0xff]   ;;  %v1024_v12 = vld [vmem:[#allocation5 + $0x20] sm:$0xff]   ;;  %v1026_v14 = vld [vmem:[#allocation5 + $0x28] sm:$0xff]   ;;  %v1152_v47 = vmov 2131351028  }
  0x3a   :  { %932 = vmatprep.subr.bf16.mxu0 %v1148_v5  ;;  %952 = vmatprep.subr.bf16.mxu1 %v1148_v5  ;;  %v1023_v11 = vld [vmem:[#allocation2 + $0x18] sm:$0xff]   ;;  %v1025_v13 = vld [vmem:[#allocation2 + $0x20] sm:$0xff]   ;;  %v1027_v15 = vld [vmem:[#allocation2 + $0x28] sm:$0xff]   ;;  %v1153_v49 = vmov 2102212464  }
  0x3b   :  { %946 = vmatprep.mubr.msk.bf16.mxu0 %vm1149_vm0, %v1148_v5  ;;  %966 = vmatprep.mubr.msk.bf16.mxu1 %vm1149_vm0, %v1148_v5  ;;  %v1028_v16 = vld [vmem:[#allocation5 + $0x30] sm:$0xff]   ;;  %v1030_v18 = vld [vmem:[#allocation5 + $0x38] sm:$0xff]   ;;  %v860_v20 = vld [vmem:[%s1386_s1] ss:$0 sm:$0xff]  ;;  %v1154_v51 = vmov 920167782  }
  0x3c   :  { %79 = vperm.xlu0 %1015, %v70_v2   ;;  %v1029_v17 = vld [vmem:[#allocation2 + $0x30] sm:$0xff]   ;;  %v1031_v19 = vld [vmem:[#allocation2 + $0x38] sm:$0xff]   ;;  %v1155_v58 = vmov 1326507024  }
  0x3d   :  { %933 = vmatpush3.bf16.msra.mxu0 %v1018_v6  ;;  %953 = vmatpush3.bf16.msra.mxu1 %v1019_v7 }
  0x3e   :  { %934 = vmatprep.subr.bf16.mxu0 %v1148_v5  ;;  %954 = vmatprep.subr.bf16.mxu1 %v1148_v5 }
  0x41   :  { %935 = vmatpush3.bf16.msra.mxu0 %v1020_v8  ;;  %955 = vmatpush3.bf16.msra.mxu1 %v1021_v9 }
  0x42   :  { %936 = vmatprep.subr.bf16.mxu0 %v1148_v5  ;;  %956 = vmatprep.subr.bf16.mxu1 %v1148_v5 }
  0x45   :  { %937 = vmatpush3.bf16.msra.mxu0 %v1022_v10  ;;  %957 = vmatpush3.bf16.msra.mxu1 %v1023_v11 }
  0x46   :  { %938 = vmatprep.subr.bf16.mxu0 %v1148_v5  ;;  %958 = vmatprep.subr.bf16.mxu1 %v1148_v5 }
  0x49   :  { %939 = vmatpush3.bf16.msra.mxu0 %v1024_v12  ;;  %959 = vmatpush3.bf16.msra.mxu1 %v1025_v13 }
  0x4a   :  { %940 = vmatprep.subr.bf16.mxu0 %v1148_v5  ;;  %960 = vmatprep.subr.bf16.mxu1 %v1148_v5 }
  0x4d   :  { %941 = vmatpush3.bf16.msra.mxu0 %v1026_v14  ;;  %961 = vmatpush3.bf16.msra.mxu1 %v1027_v15 }
  0x4e   :  { %942 = vmatprep.subr.bf16.mxu0 %v1148_v5  ;;  %962 = vmatprep.subr.bf16.mxu1 %v1148_v5 }
  0x51   :  { %943 = vmatpush3.bf16.msra.mxu0 %v1028_v16  ;;  %963 = vmatpush3.bf16.msra.mxu1 %v1029_v17 }
  0x52   :  { %944 = vmatprep.subr.bf16.mxu0 %v1148_v5  ;;  %964 = vmatprep.subr.bf16.mxu1 %v1148_v5 }
  0x55   :  { %945 = vmatpush3.bf16.msra.mxu0 %v1030_v18  ;;  %965 = vmatpush3.bf16.msra.mxu1 %v1031_v19 }
  0x56   :  { %970 = vmatprep.subr.bf16.mxu0 %v1148_v5 }
  0xb7   :  { %v75_v21 = vpop.permute.xlu0 %74 }
  0xb8   :  { %v1281_v22 = vmul.f32 %v860_v20, %v75_v21 }
  0xba   :  { %v90_v23 = vand.u32 2147483647, %v1281_v22  ;;  %v93_v24 = vand.u32 2139095040, %v1281_v22  ;;  %vm92_vm15 = vcmp.lt.s32.totalorder %v1281_v22, 0 }
  0xbb   :  { %v80_v25 = vpop.permute.xlu0 %79 }
  0xbc   :  { %v94_v26 = vshrl.u32 %v93_v24, 23  ;;  %v1285_v27 = vmul.f32 %v860_v20, %v80_v25  ;;  %v97_v28 = vand.u32 8388607, %v90_v23 }
  0xbe   :  { %v861_v29 = vadd.s32 4294967169, %v94_v26  ;;  %v197_v30 = vand.u32 2139095040, %v1285_v27  ;;  %v98_v32 = vor.u32 8388608, %v97_v28  ;;  %v194_v34 = vand.u32 2147483647, %v1285_v27 }
  0xc0   :  { %v100_v31 = vadd.s32 1, %v861_v29  ;;  %v198_v33 = vshrl.u32 %v197_v30, 23  ;;  %v1291_v39 = vshll.u32 %v98_v32, 8  ;;  %v201_v43 = vand.u32 8388607, %v194_v34 }
  0xc2   :  { %vm101_vm1 = vcmp.gt.s32.totalorder %v100_v31, 0  ;;  %v865_v36 = vadd.s32 4294967169, %v198_v33  ;;  %v202_v10 = vor.u32 8388608, %v201_v43 }
  0xc3   :  { %v102_v35 = vsel %vm101_vm1, %v100_v31, 0  ;;  %vm1339_vm1 = vcmp.le.f32.partialorder %v90_v23, 0.7853982 }
  0xc4   :  { %v103_v37 = vshrl.u32 %v102_v35, 5  ;;  %v104_v38 = vand.u32 31, %v102_v35  ;;  %v204_v44 = vadd.s32 1, %v865_v36  ;;  %v242_v25 = vshll.u32 %v202_v10, 8 }
  0xc6   :  { %v105_v40 = vsub.s32 32, %v104_v38  ;;  %v107_v42 = vshll.u32 %v1150_v41, %v104_v38  ;;  %v110_v46 = vshll.u32 %v1151_v45, %v104_v38  ;;  %v113_v48 = vshll.u32 %v1152_v47, %v104_v38 }
  0xc7   :  { %v116_v50 = vshll.u32 %v1153_v49, %v104_v38  ;;  %v119_v52 = vshll.u32 %v1154_v51, %v104_v38  ;;  %vm122_vm2 = vcmp.lt.s32.totalorder %v103_v37, 1  ;;  %vm124_vm3 = vcmp.lt.s32.totalorder %v103_v37, 3 }
  0xc8   :  { %v108_v53 = vshrl.u32 %v1151_v45, %v105_v40  ;;  %v111_v54 = vshrl.u32 %v1152_v47, %v105_v40  ;;  %v114_v55 = vshrl.u32 %v1153_v49, %v105_v40  ;;  %v106_v56 = vshrl.u32 %v1150_v41, %v105_v40 }
  0xc9   :  { %v117_v57 = vshrl.u32 %v1154_v51, %v105_v40  ;;  %v120_v59 = vshrl.u32 %v1155_v58, %v105_v40  ;;  %vm205_vm4 = vcmp.gt.s32.totalorder %v204_v44, 0  ;;  %vm125_vm5 = vcmp.lt.s32.totalorder %v103_v37, 4 }
  0xca   :  { %v109_v60 = vor.u32 %v108_v53, %v107_v42  ;;  %v112_v61 = vor.u32 %v111_v54, %v110_v46  ;;  %v115_v62 = vor.u32 %v114_v55, %v113_v48  ;;  %v206_v1 = vsel %vm205_vm4, %v204_v44, 0 }
  0xcb   :  { %v118_v63 = vor.u32 %v117_v57, %v116_v50  ;;  %v121_v0 = vor.u32 %v120_v59, %v119_v52  ;;  %vm123_vm6 = vcmp.lt.s32.totalorder %v103_v37, 2  ;;  %v208_v13 = vand.u32 31, %v206_v1 }
  0xcc   :  { %v126_v2 = vsel %vm122_vm2, %v106_v56, %v109_v60  ;;  %v127_v3 = vsel %vm125_vm5, %v115_v62, 2102212464  ;;  %v130_v4 = vsel %vm122_vm2, %v109_v60, %v112_v61  ;;  %v134_v6 = vsel %vm122_vm2, %v112_v61, %v115_v62 }
  0xcd   :  { %v128_v7 = vsel %vm124_vm3, %v112_v61, %v127_v3  ;;  %v131_v8 = vsel %vm125_vm5, %v118_v63, 920167782  ;;  %v135_v9 = vsel %vm125_vm5, %v121_v0, 1326507024  ;;  %v207_v21 = vshrl.u32 %v206_v1, 5 }
  0xce   :  { %v132_v11 = vsel %vm124_vm3, %v115_v62, %v131_v8  ;;  %v136_v12 = vsel %vm124_vm3, %v118_v63, %v135_v9  ;;  %v129_v14 = vsel %vm123_vm6, %v126_v2, %v128_v7  ;;  %v209_v24 = vsub.s32 32, %v208_v13 }
  0xcf   :  { %v133_v15 = vsel %vm123_vm6, %v130_v4, %v132_v11  ;;  %v137_v16 = vsel %vm123_vm6, %v134_v6, %v136_v12  ;;  %v145_v26 = vmul.u32 %v1291_v39, %v129_v14  ;;  %v211_v28 = vshll.u32 %v1150_v41, %v208_v13 }
  0xd0   :  { %v1304_v17 = vmul.u32.u64.low %v1291_v39, %v137_v16  ;;  %v1305_v18 = vmul.u32.u64.high %v1291_v39, %v137_v16, %v1304_v17  ;;  %v1308_v19 = vmul.u32.u64.low %v1291_v39, %v133_v15  ;;  %v1309_v20 = vmul.u32.u64.high %v1291_v39, %v133_v15, %v1308_v19 }
  0xd1   :  { %v214_v29 = vshll.u32 %v1151_v45, %v208_v13  ;;  %v217_v30 = vshll.u32 %v1152_v47, %v208_v13  ;;  %v212_v31 = vshrl.u32 %v1151_v45, %v209_v24  ;;  %v215_v32 = vshrl.u32 %v1152_v47, %v209_v24 }
  0xd2   :  { %v218_v33 = vshrl.u32 %v1153_v49, %v209_v24  ;;  %v220_v35 = vshll.u32 %v1153_v49, %v208_v13  ;;  %vm147_vm7 = vc.u32 %v1305_v18, %v1308_v19  ;;  %v148_v36 = vadd.s32 1, %v1309_v20 }
  0xd3   :  { %v221_v37 = vshrl.u32 %v1154_v51, %v209_v24  ;;  %v223_v38 = vshll.u32 %v1154_v51, %v208_v13  ;;  %v213_v40 = vor.u32 %v212_v31, %v211_v28  ;;  %v216_v42 = vor.u32 %v215_v32, %v214_v29 }
  0xd4   :  { %v219_v43 = vor.u32 %v218_v33, %v217_v30  ;;  %v224_v44 = vshrl.u32 %v1155_v58, %v209_v24  ;;  %v149_v39 = vsel %vm147_vm7, %v148_v36, %v1309_v20  ;;  %vm226_vm8 = vcmp.lt.s32.totalorder %v207_v21, 1 }
  0xd5   :  { %v222_v46 = vor.u32 %v221_v37, %v220_v35  ;;  %vm229_vm9 = vcmp.lt.s32.totalorder %v207_v21, 4  ;;  %v150_v45 = vadd.s32 %v149_v39, %v145_v26  ;;  %vm228_vm10 = vcmp.lt.s32.totalorder %v207_v21, 3 }
  0xd6   :  { %v225_v47 = vor.u32 %v224_v44, %v223_v38  ;;  %v231_v48 = vsel %vm229_vm9, %v219_v43, 2102212464  ;;  %v210_v49 = vshrl.u32 %v1150_v41, %v209_v24  ;;  %v234_v50 = vsel %vm226_vm8, %v213_v40, %v216_v42 }
  0xd7   :  { %v235_v52 = vsel %vm229_vm9, %v222_v46, 920167782  ;;  %v238_v53 = vsel %vm226_vm8, %v216_v42, %v219_v43  ;;  %v151_v54 = vadd.s32 536870912, %v150_v45  ;;  %vm227_vm11 = vcmp.lt.s32.totalorder %v207_v21, 2 }
  0xd8   :  { %v236_v51 = vsel %vm228_vm10, %v219_v43, %v235_v52  ;;  %v239_v55 = vsel %vm229_vm9, %v225_v47, 1326507024  ;;  %v230_v56 = vsel %vm226_vm8, %v210_v49, %v213_v40  ;;  %v232_v57 = vsel %vm228_vm10, %v216_v42, %v231_v48 }
  0xd9   :  { %v237_v58 = vsel %vm227_vm11, %v234_v50, %v236_v51  ;;  %v240_v59 = vsel %vm228_vm10, %v222_v46, %v239_v55  ;;  %v1319_v60 = vshrl.u32 %v151_v54, 30  ;;  %v233_v2 = vsel %vm227_vm11, %v230_v56, %v232_v57 }
  0xda   :  { %v241_v61 = vsel %vm227_vm11, %v238_v53, %v240_v59  ;;  %v1321_v62 = vmul.u32.u64.low %v242_v25, %v237_v58  ;;  %v1322_v63 = vmul.u32.u64.high %v242_v25, %v237_v58, %v1321_v62  ;;  %v249_v6 = vmul.u32 %v242_v25, %v233_v2 }
  0xdb   :  { %v1324_v0 = vmul.u32.u64.low %v242_v25, %v241_v61  ;;  %v1325_v1 = vmul.u32.u64.high %v242_v25, %v241_v61, %v1324_v0  ;;  %v153_v41 = vshll.u32 %v1319_v60, 30  ;;  %v146_v20 = vadd.s32 %v1308_v19, %v1305_v18 }
  0xdc   :  { %v252_v4 = vadd.s32 1, %v1322_v63  ;;  %v176_v54 = vsub.s32 4, %v1319_v60  ;;  %vm196_vm2 = vcmp.lt.s32.totalorder %v1285_v27, 0  ;;  %vm195_vm3 = vcmp.le.f32.partialorder %v194_v34, 0.7853982 }
  0xdd   :  { %v154_v3 = vsub.s32 %v150_v45, %v153_v41  ;;  %vm251_vm12 = vc.u32 %v1325_v1, %v1321_v62  ;;  %v250_v43 = vadd.s32 %v1321_v62, %v1325_v1 }
  0xde   :  { %v253_v8 = vsel %vm251_vm12, %v252_v4, %v1322_v63  ;;  %v177_v23 = vsel %vm92_vm15, %v176_v54, %v1319_v60 }
  0xdf   :  { %v156_v7 = vsub.s32 0, %v154_v3  ;;  %v254_v9 = vadd.s32 %v253_v8, %v249_v6  ;;  %v179_v61 = vsel %vm1339_vm1, 0, %v177_v23 }
  0xe0   :  { %v183_v1 = vadd.s32 3, %v179_v61 }
  0xe1   :  { %v862_v10 = vmin.u32 %v156_v7, %v154_v3  ;;  %v255_v11 = vadd.s32 536870912, %v254_v9 }
  0xe2   :  { %v184_v4 = vand.u32 3, %v183_v1 }
  0xe3   :  { %v158_v12 = vclz %v862_v10  ;;  %v256_v13 = vshrl.u32 %v255_v11, 30 }
  0xe4   :  { %vm186_vm6 = vcmp.eq.s32.totalorder %v184_v4, 0  ;;  %vm189_vm7 = vcmp.eq.s32.totalorder %v184_v4, 2  ;;  %vm185_vm10 = vcmp.lt.s32.totalorder %v184_v4, 2 }
  0xe5   :  { %v863_v14 = vadd.s32 4294967294, %v158_v12  ;;  %v257_v15 = vshll.u32 %v256_v13, 30  ;;  %v280_v57 = vsub.s32 4, %v256_v13 }
  0xe7   :  { %vm864_vm13 = vcmp.lt.s32.totalorder %v863_v14, 0  ;;  %v258_v17 = vsub.s32 %v254_v9, %v257_v15  ;;  %v281_v62 = vsel %vm196_vm2, %v280_v57, %v256_v13  ;;  %v894_v57 = vld [vmem:[%s1391_s6] ss:$0 sm:$0xff] }
  0xe8   :  { %v161_v16 = vsel %vm864_vm13, 0, %v863_v14  ;;  %v283_v0 = vsel %vm195_vm3, 0, %v281_v62 }
  0xe9   :  { %v162_v21 = vsub.s32 32, %v161_v16  ;;  %v166_v24 = vsub.s32 4294967266, %v161_v16  ;;  %v260_v25 = vsub.s32 0, %v258_v17  ;;  %v163_v26 = vshll.u32 %v154_v3, %v161_v16 }
  0xea   :  { %v287_v60 = vadd.s32 3, %v283_v0  ;;  %v392_v3 = vand.u32 3, %v179_v61  ;;  %v495_v8 = vand.u32 3, %v283_v0 }
  0xeb   :  { %v164_v28 = vshrl.u32 %v146_v20, %v162_v21  ;;  %v167_v29 = vadd.s32 127, %v166_v24  ;;  %v866_v30 = vmin.u32 %v260_v25, %v258_v17 }
  0xec   :  { %v288_v34 = vand.u32 3, %v287_v60  ;;  %vm394_vm4 = vcmp.eq.s32.totalorder %v392_v3, 0  ;;  %vm397_vm5 = vcmp.eq.s32.totalorder %v392_v3, 2  ;;  %vm393_vm8 = vcmp.lt.s32.totalorder %v392_v3, 2 }
  0xed   :  { %v165_v31 = vor.u32 %v164_v28, %v163_v26  ;;  %v168_v32 = vshll.u32 %v167_v29, 23  ;;  %v262_v33 = vclz %v866_v30  ;;  %vm497_vm9 = vcmp.eq.s32.totalorder %v495_v8, 0 }
  0xee   :  { %vm500_vm11 = vcmp.eq.s32.totalorder %v495_v8, 2  ;;  %vm290_vm12 = vcmp.eq.s32.totalorder %v288_v34, 0  ;;  %vm293_vm13 = vcmp.eq.s32.totalorder %v288_v34, 2 }
  0xef   :  { %v169_v35 = vor.u32 4788187, %v168_v32  ;;  %v867_v36 = vadd.s32 4294967294, %v262_v33  ;;  %v172_v38 = vcvt.s32.f32 %v165_v31 }
  0xf1   :  { %v170_v37 = vand.u32 2147483647, %v169_v35  ;;  %vm868_vm14 = vcmp.lt.s32.totalorder %v867_v36, 0  ;;  %v1032_v35 = vld [vmem:[#allocation7] sm:$0xff]  }
  0xf2   :  { %v265_v42 = vsel %vm868_vm14, 0, %v867_v36  ;;  %vm496_vm14 = vcmp.lt.s32.totalorder %v495_v8, 2 }
  0xf3   :  { %v173_v40 = vmul.f32 %v172_v38, %v170_v37  ;;  %v266_v18 = vsub.s32 32, %v265_v42  ;;  %v270_v19 = vsub.s32 4294967266, %v265_v42  ;;  %v267_v39 = vshll.u32 %v258_v17, %v265_v42  ;;  %v1033_v38 = vld [vmem:[#allocation7 + $0x8] sm:$0xff]  }
  0xf4   :  { %v1037_v42 = vld [vmem:[#allocation7 + $0x28] sm:$0xff]  }
  0xf5   :  { %v174_v44 = vxor.u32 2147483648, %v173_v40  ;;  %v268_v46 = vshrl.u32 %v250_v43, %v266_v18  ;;  %v271_v45 = vadd.s32 127, %v270_v19  ;;  %v1038_v43 = vld [vmem:[#allocation7 + $0x30] sm:$0xff]   ;;  %v1039_v18 = vld [vmem:[#allocation7 + $0x38] sm:$0xff]  }
  0xf7   :  { %v175_v47 = vsel %vm92_vm15, %v174_v44, %v173_v40  ;;  %v269_v49 = vor.u32 %v268_v46, %v267_v39  ;;  %v272_v50 = vshll.u32 %v271_v45, 23  ;;  %vm289_vm15 = vcmp.lt.s32.totalorder %v288_v34, 2  ;;  %v1036_v40 = vld [vmem:[#allocation7 + $0x20] sm:$0xff]  }
  0xf8   :  { %v178_v52 = vsel %vm1339_vm1, %v1281_v22, %v175_v47  ;;  %vm182_vm1 = vweird.f32 %v1281_v22  ;;  %v1034_v22 = vld [vmem:[#allocation7 + $0x10] sm:$0xff]   ;;  %v893_v39 = vld [vmem:[%s1389_s4] ss:$0 sm:$0xff]  ;;  %s1156_s4 = smov [#allocation8]  }
  0xf9   :  { %v273_v53 = vor.u32 4788187, %v272_v50  ;;  %1040 = vcosq.f32 %v178_v52  ;;  %v276_v55 = vcvt.s32.f32 %v269_v49  ;;  %s847_s21 = sshll.u32 %s1156_s4, 4  ;;  %s848_s21 = int_to_ptr.vmem [resolvable:$true] %s847_s21 }
  0xfa   :  { %1042 = vsinq.f32 %v178_v52  ;;  %s1114_s22 = scalar_lea.vmem %s848_s21, 256  ;;  %p1119_p11 = scmp.lt.s32.totalorder %s848_s21, %s848_s21 }
  0xfb   :  { %v274_v51 = vand.u32 2147483647, %v273_v53  ;;  %p1115_p10 = scmp.ne.s32.totalorder %s848_s21, %s1114_s22  ;;  %p1120_p12 = scmp.lt.s32.totalorder %s1114_s22, %s1114_s22 }
  0xfd   :  { %v277_v56 = vmul.f32 %v276_v55, %v274_v51  ;;  %p1121_p13 = por %p1120_p12, %p1119_p11 }
  0xff   :  { %v278_v58 = vxor.u32 2147483648, %v277_v56  ;;  %p1122_p0 = pnand %p1121_p13, %p1115_p10 }
 0x101   :  { %v279_v59 = vsel %vm196_vm2, %v278_v58, %v277_v56  ;;  %vm286_vm2 = vweird.f32 %v1285_v27 }
 0x102   :  { %v282_v63 = vsel %vm195_vm3, %v1285_v27, %v279_v59  ;;  %v1035_v27 = vld [vmem:[#allocation7 + $0x18] sm:$0xff]  }
 0x103   :  { %1044 = vcosq.f32 %v282_v63  ;;  %v1041_v41 = vpop.eup %1040 }
 0x104   :  { %1046 = vsinq.f32 %v282_v63  ;;  %v1043_v2 = vpop.eup %1042  ;;  %v190_v7 = vxor.u32 2147483648, %v1041_v41 }
 0x105   :  { %v187_v6 = vxor.u32 2147483648, %v1043_v2 }
 0x106   :  { %v399_v11 = vsel %vm397_vm5, %v190_v7, %v1043_v2  ;;  %v191_v13 = vsel %vm189_vm7, %v190_v7, %v1043_v2 }
 0x107   :  { %v396_v10 = vsel %vm394_vm4, %v1041_v41, %v187_v6  ;;  %v188_v12 = vsel %vm186_vm6, %v1041_v41, %v187_v6 }
 0x108   :  { %v400_v17 = vsel %vm393_vm8, %v396_v10, %v399_v11  ;;  %v192_v21 = vsel %vm185_vm10, %v188_v12, %v191_v13 }
 0x109   :  { %v401_v30 = vsel %vm182_vm1, nan, %v400_v17  ;;  %v193_v32 = vsel %vm182_vm1, nan, %v192_v21 }
 0x10d   :  { %v1045_v9 = vpop.eup %1044 }
 0x10e   :  { %v1047_v14 = vpop.eup %1046  ;;  %v294_v15 = vxor.u32 2147483648, %v1045_v9 }
 0x10f   :  { %v291_v16 = vxor.u32 2147483648, %v1047_v14 }
 0x110   :  { %v502_v20 = vsel %vm500_vm11, %v294_v15, %v1047_v14  ;;  %v295_v24 = vsel %vm293_vm13, %v294_v15, %v1047_v14 }
 0x111   :  { %v499_v25 = vsel %vm497_vm9, %v1045_v9, %v291_v16  ;;  %v292_v26 = vsel %vm290_vm12, %v1045_v9, %v291_v16 }
 0x112   :  { %v503_v28 = vsel %vm496_vm14, %v499_v25, %v502_v20  ;;  %v296_v29 = vsel %vm289_vm15, %v292_v26, %v295_v24 }
 0x113   :  { %v504_v31 = vsel %vm286_vm2, nan, %v503_v28  ;;  %v297_v33 = vsel %vm286_vm2, nan, %v296_v29 }
 0x114   :  { %v505_v36 = vpack.c.bf16 %v504_v31, %v401_v30  ;;  %v298_v37 = vpack.c.bf16 %v297_v33, %v193_v32 }
 0x116   :  { %947 = vmatmul.mubr.bf16.vlgmr.msra.gmra.mrb[0].mxu0 %v505_v36  ;;  %967 = vmatmul.mubr.bf16.vlgmr.msra.gmra.mrb[0].mxu1 %v298_v37 }
 0x117   :  { %971 = vmatpush3.bf16.msra.mxu0 %v1032_v35  ;;  %986 = vmatprep.mubr.msk.bf16.mxu0 %vm1149_vm0, %v1148_v5 }
 0x118   :  { %972 = vmatprep.subr.bf16.mxu0 %v1148_v5 }
 0x11b   :  { %973 = vmatpush3.bf16.msra.mxu0 %v1033_v38 }
 0x11c   :  { %974 = vmatprep.subr.bf16.mxu0 %v1148_v5 }
 0x11f   :  { %975 = vmatpush3.bf16.msra.mxu0 %v1034_v22 }
 0x120   :  { %976 = vmatprep.subr.bf16.mxu0 %v1148_v5 }
 0x123   :  { %977 = vmatpush3.bf16.msra.mxu0 %v1035_v27 }
 0x124   :  { %978 = vmatprep.subr.bf16.mxu0 %v1148_v5 }
 0x127   :  { %979 = vmatpush3.bf16.msra.mxu0 %v1036_v40 }
 0x128   :  { %980 = vmatprep.subr.bf16.mxu0 %v1148_v5 }
 0x12b   :  { %981 = vmatpush3.bf16.msra.mxu0 %v1037_v42 }
 0x12c   :  { %982 = vmatprep.subr.bf16.mxu0 %v1148_v5 }
 0x12f   :  { %983 = vmatpush3.bf16.msra.mxu0 %v1038_v43 }
 0x130   :  { %984 = vmatprep.subr.bf16.mxu0 %v1148_v5 }
 0x133   :  { %985 = vmatpush3.bf16.msra.mxu0 %v1039_v18 }
 0x1e9   :  { %v620_v19 = vpop.f32.mrb[0].mxu0  ;;  %v709_v44 = vpop.f32.mrb[0].mxu1 }
 0x1ea   :  { %v710_v46 = vadd.f32 %v709_v44, %v620_v19  ;;  %v948_v45 = vpop.f32.mrb[1].mxu0  ;;  %v968_v47 = vpop.f32.mrb[1].mxu1 }
 0x1eb   :  { %v623_v48 = vpop.f32.mrb[2].mxu0  ;;  %v712_v49 = vpop.f32.mrb[2].mxu1 }
 0x1ec   :  { %v723_v50 = vadd.f32 %v893_v39, %v710_v46  ;;  %v713_v52 = vadd.f32 %v712_v49, %v623_v48  ;;  %v949_v53 = vpop.f32.mrb[3].mxu0  ;;  %v969_v54 = vpop.f32.mrb[3].mxu1 }
 0x1ee   :  { %v724_v51 = vadd.f32 %v893_v39, %v713_v52  ;;  %v725_v55 = vmax.f32 %v723_v50, 0.0 }
 0x1f0   :  { %v726_v5 = vmax.f32 %v724_v51, 0.0 }
 0x1f2   :  { %v727_v56 = vpack.c.bf16 %v726_v5, %v725_v55 }
 0x1f4   :  { %987 = vmatmul.mubr.bf16.vlgmr.msra.gmra.mrb[4].mxu0 %v727_v56 }
 0x2c7   :  { %v833_v23 = vpop.f32.mrb[4].mxu0 }
 0x2c8   :  { %v834_v58 = vadd.f32 %v894_v57, %v833_v23  ;;  %v988_v59 = vpop.f32.mrb[5].mxu0 }
 0x2c9   :  { %v836_v61 = vpop.f32.mrb[6].mxu0 }
 0x2ca   :  { %840 = vst [vmem:[#allocation8] sm:$0xff] %v834_v58  ;;  %v837_v62 = vadd.f32 %v894_v57, %v836_v61  ;;  %v989_v63 = vpop.f32.mrb[7].mxu0 }
 0x2cc   :  { %841 = vst [vmem:[#allocation8 + $0x8] sm:$0xff] %v837_v62 }
 0x2cd   :  { %1125 = shalt.err (!%p1122_p0)
}
 0x2ce   :  { %s1126_s24 = scalar_lea.hbm %s1392_s7, 256 }
 0x2cf   :  { %p1127_p1 = scmp.ne.s32.totalorder %s1392_s7, %s1126_s24  ;;  %p1130_p2 = scmp.lt.u32.totalorder %s1126_s24, %s1392_s7 }
 0x2d1   :  { %p1132_p3 = pnand %p1130_p2, %p1127_p1 }
 0x2d3   :  { %1135 = shalt.err (!%p1132_p3)
}
 0x2d4   :  { %s1157_s29 = smov 128   ;;  %s1158_s30 = smov 8  }
 0x2d5   :  { %853 = dma.vmem_to_hbm [thread:$0]  %s848_s21, 256, %s1392_s7, [#allocation4], %s1157_s29, %s1157_s29, %s1158_s30  }
 0x2d6   :  { %1140 = dma.done.wait [#allocation4], 256  }
 0x2d7   :  { %1141 = vsyncadd [#allocation4], 4294967040 }
 0x2d8   :  { %857 = vsyncpa [#allocation3], 1 }
 0x2d9   :  { %858 = vsyncpa [#allocation6], 1 }
 0x2da   :  { %859 = vsyncpa [#allocation4], 1 }

</bundles_post_ra>
